<compile_context>
chip_gen: v6e
topology: v6e:2x2x1
jax: 0.10.0
libtpu: 0.0.40
codegen_flags: <defaults>
</compile_context>

<pallas_src>
import numpy as np
import jax
import jax.numpy as jnp
from jax import lax
from jax.experimental import pallas as pl
from jax.experimental.pallas import tpu as pltpu


def _rotate_translate_kernel(ix_ref, iy_ref, inx_ref, iny_ref, img_ref,
                             out_ref, acc_ref):
    # Grid: (batch-block g ["parallel"], q-tile k ["arbitrary" / reduction]).
    #   ix_ref / iy_ref : (Bb, 1, P)  per-output-pixel sample coords (input px space)
    #   inx_ref/iny_ref : (QT, P)     pre-broadcast input-pixel coords of this q-tile
    #   img_ref         : (Bb, C, QT)
    #   out_ref         : (Bb, C, P)  resident across the q axis
    #   acc_ref         : (Bb, C, P)  f32 accumulator scratch
    k = pl.program_id(1)
    bb = img_ref.shape[0]

    @pl.when(k == 0)
    def _init():
        acc_ref[...] = jnp.zeros_like(acc_ref)

    # Batch-invariant coordinates: load once per grid step, OUTSIDE the
    # per-image loop (JAX does not CSE broadcast/load re-materialization).
    inx = inx_ref[...]          # (QT, P) f32
    iny = iny_ref[...]          # (QT, P) f32

    def body(i, carry):
        ix = ix_ref[i]          # (1, P), lane-oriented -> no relayout needed
        iy = iy_ref[i]
        # Dense transposed bilinear sampling tile:
        #   M^T[q, p] = relu(1 - |ix[p]-inx[q]|) * relu(1 - |iy[p]-iny[q]|)
        # Reproduces grid_sample(bilinear, zeros padding, align_corners=False)
        # exactly: out-of-range neighbours get weight 0, no gather needed.
        wx = jnp.maximum(1.0 - jnp.abs(inx - ix), 0.0)       # (QT, P) f32
        wy = jnp.maximum(1.0 - jnp.abs(iny - iy), 0.0)       # (QT, P) f32
        m_t = (wx * wy).astype(jnp.bfloat16)                 # bf16 MXU operand
        img_i = img_ref[i].astype(jnp.bfloat16)              # (C, QT)
        part = lax.dot_general(img_i, m_t, (((1,), (0,)), ((), ())),
                               preferred_element_type=jnp.float32)   # (C, P) f32
        acc_ref[i] = acc_ref[i] + part
        return carry

    # fori_loop (vs a static Python for) bounds per-image live ranges so
    # wx/wy/m_t for different images are never simultaneously live; unroll
    # gives the LLO scheduler visibility across back-to-back matmuls.
    lax.fori_loop(0, bb, body, 0, unroll=True)

    @pl.when(k == pl.num_programs(1) - 1)
    def _finalize():
        out_ref[...] = acc_ref[...].astype(out_ref.dtype)


def random_rotate_translate(img, key, max_trans=2.0, training=True,
                            block_b=16):
    """Pallas equivalent of RandomRotateTranslate.forward."""
    if not training:
        return img, None

    B, C, H, W = img.shape
    P = H * W
    Q = P

    # ---- randomness + affine matrices (glue; matches the PyTorch module) ----
    k_ang, k_tx, k_ty = jax.random.split(key, 3)
    angles = jax.random.uniform(k_ang, (B,), jnp.float32) * 2.0 * np.pi
    tx = (2.0 * jax.random.uniform(k_tx, (B,), jnp.float32) - 1.0) * max_trans / W
    ty = (2.0 * jax.random.uniform(k_ty, (B,), jnp.float32) - 1.0) * max_trans / H
    cos, sin = jnp.cos(angles), jnp.sin(angles)
    # rows of the 2x3 affine matrix: [cos, sin, tx], [-sin, cos, ty]
    theta = jnp.stack([cos, sin, tx, -sin, cos, ty], axis=-1)        # (B, 6)

    # ---- hoisted index math: F.affine_grid + grid_sample unnormalization ----
    pid = jnp.arange(P, dtype=jnp.int32)
    ow = (pid % W).astype(jnp.float32)
    oh = (pid // W).astype(jnp.float32)
    xb = (2.0 * ow + 1.0) / W - 1.0        # base grid, align_corners=False
    yb = (2.0 * oh + 1.0) / H - 1.0
    gx = theta[:, 0:1] * xb[None] + theta[:, 1:2] * yb[None] + theta[:, 2:3]  # (B, P)
    gy = theta[:, 3:4] * xb[None] + theta[:, 4:5] * yb[None] + theta[:, 5:6]
    ix = (((gx + 1.0) * W - 1.0) * 0.5)[:, None, :]    # (B, 1, P) input-px coords
    iy = (((gy + 1.0) * H - 1.0) * 0.5)[:, None, :]

    # Batch-invariant input-pixel coords, pre-broadcast & lane-dense (no (Q,1)
    # blocks, no in-loop column->lane broadcast).
    inx_b = jnp.broadcast_to(ow[:, None], (Q, P))      # (Q, P)
    iny_b = jnp.broadcast_to(oh[:, None], (Q, P))

    # ---- batch blocking: amortize per-step overhead, but keep >=2 steps on
    # the "parallel" axis so both v7x TensorCores get work.
    Bb = max(1, min(block_b, int(pl.cdiv(B, 2))))
    num_b = int(pl.cdiv(B, Bb))
    Bpad = num_b * Bb

    # ---- Q (reduction) tiling: keep each (QT, P) f32 tile around <=4 MiB.
    qt_cap = max(128, ((4 << 20) // (4 * P)) // 128 * 128)
    QT = Q if Q <= qt_cap else qt_cap
    num_q = int(pl.cdiv(Q, QT))
    Qpad = num_q * QT

    img_flat = img.reshape(B, C, Q)
    if Bpad != B:
        pb = Bpad - B
        img_flat = jnp.pad(img_flat, ((0, pb), (0, 0), (0, 0)))
        ix = jnp.pad(ix, ((0, pb), (0, 0), (0, 0)))
        iy = jnp.pad(iy, ((0, pb), (0, 0), (0, 0)))
    if Qpad != Q:
        pq = Qpad - Q
        img_flat = jnp.pad(img_flat, ((0, 0), (0, 0), (0, pq)))
        # Far-away coords -> zero weight (padded image rows are zero anyway).
        inx_b = jnp.pad(inx_b, ((0, pq), (0, 0)), constant_values=-4.0)
        iny_b = jnp.pad(iny_b, ((0, pq), (0, 0)), constant_values=-4.0)

    # ---- explicit VMEM budget (v7x: 64 MiB physical, 32 MiB default scoped) --
    cpad = max(C, 8)
    est = 4 * (2 * 2 * Bb * 8 * P        # ix, iy (double-buffered, 1->8 sublane pad)
               + 2 * 2 * QT * P          # inx_b, iny_b (double-buffered)
               + 2 * Bb * cpad * QT      # img blocks (double-buffered)
               + 2 * Bb * cpad * P       # out blocks (double-buffered)
               + Bb * cpad * P           # f32 accumulator scratch
               + 4 * QT * P)             # wx / wy / m_t / misc intermediates
    vmem_limit = int(min(64 << 20, max(32 << 20, int(1.25 * est))))

    out_flat = pl.pallas_call(
        _rotate_translate_kernel,
        out_shape=jax.ShapeDtypeStruct((Bpad, C, P), img.dtype),
        grid=(num_b, num_q),
        in_specs=[
            pl.BlockSpec((Bb, 1, P), lambda g, k: (g, 0, 0)),   # ix
            pl.BlockSpec((Bb, 1, P), lambda g, k: (g, 0, 0)),   # iy
            pl.BlockSpec((QT, P), lambda g, k: (k, 0)),         # inx (batch-invariant)
            pl.BlockSpec((QT, P), lambda g, k: (k, 0)),         # iny (batch-invariant)
            pl.BlockSpec((Bb, C, QT), lambda g, k: (g, 0, k)),  # img
        ],
        out_specs=pl.BlockSpec((Bb, C, P), lambda g, k: (g, 0, 0)),
        scratch_shapes=[pltpu.VMEM((Bb, C, P), jnp.float32)],
        compiler_params=pltpu.CompilerParams(
            dimension_semantics=("parallel", "arbitrary"),
            vmem_limit_bytes=vmem_limit),
    )(ix, iy, inx_b, iny_b, img_flat)

    out = out_flat[:B].reshape(B, C, H, W)
    return out, theta


def _reference(img, theta):
    """Pure-JAX gather-based reference (F.affine_grid + F.grid_sample,
    bilinear, zeros padding, align_corners=False)."""
    B, C, H, W = img.shape

    def one(img_c, th):
        t00, t01, t02, t10, t11, t12 = th
        jh = jnp.arange(H, dtype=jnp.float32)[:, None]
        jw = jnp.arange(W, dtype=jnp.float32)[None, :]
        xb = (2.0 * jw + 1.0) / W - 1.0
        yb = (2.0 * jh + 1.0) / H - 1.0
        gx = t00 * xb + t01 * yb + t02
        gy = t10 * xb + t11 * yb + t12
        ix = ((gx + 1.0) * W - 1.0) * 0.5
        iy = ((gy + 1.0) * H - 1.0) * 0.5
        x0 = jnp.floor(ix); y0 = jnp.floor(iy)
        x1 = x0 + 1.0; y1 = y0 + 1.0

        def gather(yy, xx):
            inb = ((xx >= 0) & (xx <= W - 1) & (yy >= 0) & (yy <= H - 1))
            xc = jnp.clip(xx, 0, W - 1).astype(jnp.int32)
            yc = jnp.clip(yy, 0, H - 1).astype(jnp.int32)
            return img_c[:, yc, xc] * inb.astype(img_c.dtype)

        wx1 = ix - x0; wx0 = 1.0 - wx1
        wy1 = iy - y0; wy0 = 1.0 - wy1
        return (gather(y0, x0) * wy0 * wx0 + gather(y0, x1) * wy0 * wx1 +
                gather(y1, x0) * wy1 * wx0 + gather(y1, x1) * wy1 * wx1)

    return jax.vmap(one)(img, theta)


if __name__ == "__main__":
    key = jax.random.PRNGKey(0)
    k_img, k_aug = jax.random.split(key)
    B, C, H, W = 2, 4, 16, 16
    img = jax.random.normal(k_img, (B, C, H, W), jnp.float32)

    out, theta = random_rotate_translate(img, k_aug, max_trans=2.0, training=True)
    out = jax.block_until_ready(out)

    ref = _reference(img, theta)
    assert out.shape == (B, C, H, W)
    # Tolerance loosened vs the f32 version: the sampling matrix / image are
    # cast to bf16 for the MXU matmul (accumulation stays f32).
    np.testing.assert_allclose(np.asarray(out), np.asarray(ref),
                               rtol=2e-2, atol=2e-2)
    print("KERNEL_OK")
</pallas_src>

<mosaic_0001>
module attributes {stable_mosaic.version = 11 : i64} {
  func.func @_rotate_translate_kernel(%arg0: i32, %arg1: i32, %arg2: memref<1x1x256xf32, #tpu.memory_space<vmem>>, %arg3: memref<1x1x256xf32, #tpu.memory_space<vmem>>, %arg4: memref<256x256xf32, #tpu.memory_space<vmem>>, %arg5: memref<256x256xf32, #tpu.memory_space<vmem>>, %arg6: memref<1x4x256xf32, #tpu.memory_space<vmem>>, %arg7: memref<1x4x256xf32, #tpu.memory_space<vmem>>, %arg8: memref<1x4x256xf32, #tpu.memory_space<vmem>>) attributes {dimension_semantics = [#tpu.dimension_semantics<parallel>, #tpu.dimension_semantics<arbitrary>], iteration_bounds = array<i64: 2, 1>, scalar_prefetch = 0 : i64, scratch_operands = 1 : i64, tpu.core_type = #tpu.core_type<tc>, window_params = [{transform_indices = @transform_0, window_bounds = array<i64: 1, 1, 256>}, {transform_indices = @transform_1, window_bounds = array<i64: 1, 1, 256>}, {transform_indices = @transform_2, window_bounds = array<i64: 256, 256>}, {transform_indices = @transform_3, window_bounds = array<i64: 256, 256>}, {transform_indices = @transform_4, window_bounds = array<i64: 1, 4, 256>}, {transform_indices = @transform_5, window_bounds = array<i64: 1, 4, 256>}]} {
    %c0_i32 = arith.constant 0 : i32
    %0 = arith.cmpi eq, %arg1, %c0_i32 : i32
    %1 = arith.extui %0 : i1 to i32
    %c0_i32_0 = arith.constant 0 : i32
    %2 = arith.cmpi ne, %1, %c0_i32_0 : i32
    scf.if %2 {
      %cst_21 = arith.constant 0.000000e+00 : f32
      %43 = vector.broadcast %cst_21 : f32 to vector<1x4x256xf32>
      %c0_22 = arith.constant 0 : index
      %c0_23 = arith.constant 0 : index
      %c0_24 = arith.constant 0 : index
      %44 = vector.load %arg8[%c0_22, %c0_23, %c0_24] : memref<1x4x256xf32, #tpu.memory_space<vmem>>, vector<1x4x256xf32>
      tpu.vector_store %arg8[%c0_22, %c0_23, %c0_24], %43 {strides = array<i32>} : memref<1x4x256xf32, #tpu.memory_space<vmem>>, vector<1x4x256xf32>,
    } else {
    }
    %c0 = arith.constant 0 : index
    %c0_1 = arith.constant 0 : index
    %3 = vector.load %arg4[%c0, %c0_1] : memref<256x256xf32, #tpu.memory_space<vmem>>, vector<256x256xf32>
    %c0_2 = arith.constant 0 : index
    %c0_3 = arith.constant 0 : index
    %4 = vector.load %arg5[%c0_2, %c0_3] : memref<256x256xf32, #tpu.memory_space<vmem>>, vector<256x256xf32>
    %c0_i32_4 = arith.constant 0 : i32
    %5 = arith.index_cast %c0_i32_4 : i32 to index
    %c0_5 = arith.constant 0 : index
    %c0_6 = arith.constant 0 : index
    %6 = vector.load %arg2[%5, %c0_5, %c0_6] : memref<1x1x256xf32, #tpu.memory_space<vmem>>, vector<1x1x256xf32>
    %7 = vector.shape_cast %6 : vector<1x1x256xf32> to vector<1x256xf32>
    %8 = arith.index_cast %c0_i32_4 : i32 to index
    %c0_7 = arith.constant 0 : index
    %c0_8 = arith.constant 0 : index
    %9 = vector.load %arg3[%8, %c0_7, %c0_8] : memref<1x1x256xf32, #tpu.memory_space<vmem>>, vector<1x1x256xf32>
    %10 = vector.shape_cast %9 : vector<1x1x256xf32> to vector<1x256xf32>
    %11 = vector.broadcast %7 : vector<1x256xf32> to vector<256x256xf32>
    %12 = arith.subf %3, %11 : vector<256x256xf32>
    %13 = math.absf %12 : vector<256x256xf32>
    %cst = arith.constant 1.000000e+00 : f32
    %14 = vector.broadcast %cst : f32 to vector<256x256xf32>
    %15 = arith.subf %14, %13 : vector<256x256xf32>
    %cst_9 = arith.constant 0.000000e+00 : f32
    %16 = vector.broadcast %cst_9 : f32 to vector<256x256xf32>
    %17 = arith.maximumf %15, %16 : vector<256x256xf32>
    %18 = vector.broadcast %10 : vector<1x256xf32> to vector<256x256xf32>
    %19 = arith.subf %4, %18 : vector<256x256xf32>
    %20 = math.absf %19 : vector<256x256xf32>
    %cst_10 = arith.constant 1.000000e+00 : f32
    %21 = vector.broadcast %cst_10 : f32 to vector<256x256xf32>
    %22 = arith.subf %21, %20 : vector<256x256xf32>
    %cst_11 = arith.constant 0.000000e+00 : f32
    %23 = vector.broadcast %cst_11 : f32 to vector<256x256xf32>
    %24 = arith.maximumf %22, %23 : vector<256x256xf32>
    %25 = arith.mulf %17, %24 : vector<256x256xf32>
    %26 = arith.truncf %25 : vector<256x256xf32> to vector<256x256xbf16>
    %27 = arith.index_cast %c0_i32_4 : i32 to index
    %c0_12 = arith.constant 0 : index
    %c0_13 = arith.constant 0 : index
    %28 = vector.load %arg6[%27, %c0_12, %c0_13] : memref<1x4x256xf32, #tpu.memory_space<vmem>>, vector<1x4x256xf32>
    %29 = vector.shape_cast %28 : vector<1x4x256xf32> to vector<4x256xf32>
    %30 = arith.truncf %29 : vector<4x256xf32> to vector<4x256xbf16>
    %cst_14 = arith.constant dense<0.000000e+00> : vector<4x256xf32>
    %31 = tpu.matmul %30, %26, %cst_14 {dimension_numbers = #tpu.dot_dimension_numbers<[1], [0], [0], [1], [0, 0, 1, 1], [], []>} : vector<4x256xbf16>, vector<256x256xbf16>, vector<4x256xf32> -> vector<4x256xf32>
    %32 = arith.index_cast %c0_i32_4 : i32 to index
    %c0_15 = arith.constant 0 : index
    %c0_16 = arith.constant 0 : index
    %33 = vector.load %arg8[%32, %c0_15, %c0_16] : memref<1x4x256xf32, #tpu.memory_space<vmem>>, vector<1x4x256xf32>
    %34 = vector.shape_cast %33 : vector<1x4x256xf32> to vector<4x256xf32>
    %35 = arith.addf %34, %31 : vector<4x256xf32>
    %36 = arith.index_cast %c0_i32_4 : i32 to index
    %c0_17 = arith.constant 0 : index
    %c0_18 = arith.constant 0 : index
    %37 = vector.load %arg8[%36, %c0_17, %c0_18] : memref<1x4x256xf32, #tpu.memory_space<vmem>>, vector<1x4x256xf32>
    %38 = vector.shape_cast %37 : vector<1x4x256xf32> to vector<4x256xf32>
    %39 = vector.shape_cast %35 : vector<4x256xf32> to vector<1x4x256xf32>
    tpu.vector_store %arg8[%36, %c0_17, %c0_18], %39 {strides = array<i32>} : memref<1x4x256xf32, #tpu.memory_space<vmem>>, vector<1x4x256xf32>,
    %c1_i32 = arith.constant 1 : i32
    %c0_i32_19 = arith.constant 0 : i32
    %40 = arith.cmpi eq, %arg1, %c0_i32_19 : i32
    %41 = arith.extui %40 : i1 to i32
    %c0_i32_20 = arith.constant 0 : i32
    %42 = arith.cmpi ne, %41, %c0_i32_20 : i32
    scf.if %42 {
      %c0_21 = arith.constant 0 : index
      %c0_22 = arith.constant 0 : index
      %c0_23 = arith.constant 0 : index
      %43 = vector.load %arg8[%c0_21, %c0_22, %c0_23] : memref<1x4x256xf32, #tpu.memory_space<vmem>>, vector<1x4x256xf32>
      %c0_24 = arith.constant 0 : index
      %c0_25 = arith.constant 0 : index
      %c0_26 = arith.constant 0 : index
      %44 = vector.load %arg7[%c0_24, %c0_25, %c0_26] : memref<1x4x256xf32, #tpu.memory_space<vmem>>, vector<1x4x256xf32>
      tpu.vector_store %arg7[%c0_24, %c0_25, %c0_26], %43 {strides = array<i32>} : memref<1x4x256xf32, #tpu.memory_space<vmem>>, vector<1x4x256xf32>,
    } else {
    }
    return
  }
  func.func @transform_0(%arg0: i32, %arg1: i32) -> (i32, i32, i32) {
    %c0_i32 = arith.constant 0 : i32
    %c0_i32_0 = arith.constant 0 : i32
    %c0_i32_1 = arith.constant 0 : i32
    return %arg0, %c0_i32, %c0_i32_0 : i32, i32, i32
  }
  func.func @transform_1(%arg0: i32, %arg1: i32) -> (i32, i32, i32) {
    %c0_i32 = arith.constant 0 : i32
    %c0_i32_0 = arith.constant 0 : i32
    %c0_i32_1 = arith.constant 0 : i32
    return %arg0, %c0_i32, %c0_i32_0 : i32, i32, i32
  }
  func.func @transform_2(%arg0: i32, %arg1: i32) -> (i32, i32) {
    %c0_i32 = arith.constant 0 : i32
    %c0_i32_0 = arith.constant 0 : i32
    return %arg1, %c0_i32 : i32, i32
  }
  func.func @transform_3(%arg0: i32, %arg1: i32) -> (i32, i32) {
    %c0_i32 = arith.constant 0 : i32
    %c0_i32_0 = arith.constant 0 : i32
    return %arg1, %c0_i32 : i32, i32
  }
  func.func @transform_4(%arg0: i32, %arg1: i32) -> (i32, i32, i32) {
    %c0_i32 = arith.constant 0 : i32
    %c0_i32_0 = arith.constant 0 : i32
    return %arg0, %c0_i32, %arg1 : i32, i32, i32
  }
  func.func @transform_5(%arg0: i32, %arg1: i32) -> (i32, i32, i32) {
    %c0_i32 = arith.constant 0 : i32
    %c0_i32_0 = arith.constant 0 : i32
    %c0_i32_1 = arith.constant 0 : i32
    return %arg0, %c0_i32, %c0_i32_0 : i32, i32, i32
  }
}

</mosaic_0001>

<bundles_post_ra>
// kernel: tpu_custom_call.1
= control target key start
LH: loop header
LB: loop body
LE: loop exit
PB: predicated region body
PF: predicated region fallthrough
CT: control target
= control target key end

     0   :  { %s2149_s0 = inlined_call_operand.hbm [shape: f32[2,1,256], index: 0, kind: input, shape index: {}]   ;;  %s2150_s1 = inlined_call_operand.hbm [shape: f32[2,1,256], index: 1, kind: input, shape index: {}]   ;;  %s2151_s2 = inlined_call_operand.hbm [shape: f32[256,256], index: 2, kind: input, shape index: {}]   ;;  %s2152_s3 = inlined_call_operand.hbm [shape: f32[256,256], index: 3, kind: input, shape index: {}]   ;;  %s2153_s4 = inlined_call_operand.hbm [shape: f32[2,4,256], index: 4, kind: input, shape index: {}]   ;;  %s2154_s5 = inlined_call_operand.hbm [shape: f32[2,4,256], index: 5, kind: output, shape index: {}]  }
   0x1   :  { %2164 = sst [smem:[#allocation22_spill]] %s2149_s0 }
   0x2   :  { %2165 = sst [smem:[#allocation23_spill]] %s2151_s2 }
   0x3   :  { %10 = vsyncpa [#allocation4], 0 }
   0x4   :  { %12 = vsyncpa [#allocation4 + $0x1], 0 }
   0x5   :  { %13 = vsyncpa [#allocation7], 0 }
   0x6   :  { %15 = vsyncpa [#allocation7 + $0x1], 0 }
   0x7   :  { %16 = vsyncpa [#allocation10], 0 }
   0x8   :  { %17 = vsyncpa [#allocation5], 0 }
   0x9   :  { %19 = vsyncpa [#allocation5 + $0x1], 0  ;;  %s1765_s18 = smov 0   ;;  %s1767_s19 = smov 0  }
   0xa   :  { %s1769_s20 = smov 0   ;;  %s1771_s21 = smov 0  }
   0xb   :  { %s1773_s22 = smov 0   ;;  %s1775_s23 = smov 0  }
   0xc LB: > { %s1796_s24 = sadd.s32 4294967295, %s1725_s23   ;;  %s1367_s25 = sadd.s32 4294967294, %s1725_s23   ;;  %s1725_s23 = sphi %s1775_s23, %s25_s23   ;;  %s1721_s22 = sphi %s1773_s22, %s2198_s22   ;;  %s1717_s21 = sphi %s1771_s21, %s2197_s21   ;;  %s1713_s20 = sphi %s1769_s20, %s2196_s20   ;;  %s1709_s19 = sphi %s1767_s19, %s2195_s19   ;;  %s1705_s18 = sphi %s1765_s18, %s2194_s18  }
   0xd   : > { %p57_p0 = scmp.ne.s32.totalorder %s1709_s19, %s1705_s18  ;;  %p2158_p1 = scmp.eq.s32.totalorder %s1796_s24, 0 }
   0xe   : > { %p193_p3 = scmp.eq.s32.totalorder %s1367_s25, 1  ;;  %p1368_p5 = scmp.ge.s32.totalorder %s1725_s23, 1 }
   0xf   : > { %p1805_p4 = por %p2158_p1, %p57_p0  ;;  %p200_p7 = scmp.lt.s32.totalorder %s1725_s23, 3 }
  0x10   : > { %p1810_p6 = por %p193_p3, %p57_p0  ;;  %s1727_s29 = smov [#allocation8]  }
  0x11   : > { %p1815_p8 = pnand %p1368_p5, %p200_p7  ;;  %s216_s30 = sshll.u32 %s1727_s29, 4  ;;  %s217_s30 = int_to_ptr.vmem [resolvable:$true] %s216_s30 }
  0x12   : > { %s2167_s27 = scalar_select %p1810_p6, 1, 0 }
  0x13   : > { %p1413_p9 = pneg %p1815_p8  ;;  %s37_s7 = sadd.s32 1, %s1721_s22 }
  0x14   : > { %2168 = sst [smem:[#allocation19_spill]] %s2167_s27  ;;  %s1504_s8 = scalar_lea.vmem %s217_s30, 8192 }
  0x15   : > { %p1824_p11 = pnand %p1413_p9, %p2158_p1  ;;  %p1505_p13 = scmp.ne.s32.totalorder %s217_s30, %s1504_s8 }
  0x16   : > { %p1512_p5 = scmp.lt.s32.totalorder %s217_s30, %s217_s30  ;;  %p1513_p7 = scmp.lt.s32.totalorder %s1504_s8, %s1504_s8 }
  0x17   : > { %p2159_p12 = pneg %p1824_p11 }
  0x18   : > { %p1514_p2 = por %p1513_p7, %p1512_p5 }
  0x19   : > { %p1507_p0 = pnand %p1505_p13, %p2159_p12 }
  0x1b   : > { %p1508_p3 = pneg %p1507_p0 }
  0x1d   : > { %p1515_p10 = pnand %p1514_p2, %p1508_p3 }
  0x1f   : > { %1518 = shalt.err (!%p1515_p10)
}
  0x20   : > { %s2155_s9 = smov 256   ;;  %s2156_s10 = smov 16  }
  0x21   : > { %s2171_s2 = sld [smem:[#allocation23_spill]]  ;;  %p39_p2 = scmp.ge.s32.totalorder %s37_s7, 2 }
  0x22   : > { %s44_s13 = sadd.s32 1, %s1713_s20  ;;  %p51_p9 = scmp.ne.s32.totalorder %s1713_s20, %s1709_s19 }
  0x23   : > { %p52_p10 = scmp.eq.s32.totalorder %s1725_s23, 0  ;;  %s2200_s7 = smov (%p39_p2, %s37_s7), 0 }
  0x24   : > { %2172 = sst [smem:[#allocation20_spill]] %s2200_s7  ;;  %p2174_p0 = scmp.eq.s32.totalorder %s1796_s24, 1 }
  0x25   : > { %p1848_p13 = por %p52_p10, %p51_p9  ;;  %s41_s16 = ssub.s32 %s1721_s22, %s2200_s7 }
  0x26   : > { %p1854_p3 = por %p2174_p0, %p51_p9  ;;  %p1436_p5 = scmp.lt.s32.totalorder %s1725_s23, 2 }
  0x27   : > { %1416 = dma.hbm_to_vmem [thread:$0]  (!%p1824_p11), %s2171_s2, 8192, %s217_s30, [#allocation7], %s2155_s9, %s2155_s9, %s2156_s10  }
  0x28   : > { %p42_p7 = scmp.eq.s32.totalorder %s41_s16, 0  ;;  %s2161_s17 = sand.u32 1, %s1725_s23  }
  0x29   : > { %s2160_s25 = sand.u32 1, %s1713_s20   ;;  %s1393_s8 = sshll.u32 %s1721_s22, 5 }
  0x2a   : > { %s1864_s29 = scalar_select %p42_p7, %s1713_s20, %s44_s13  }
  0x2b   : > { %s1372_s30 = sshll.u32 %s2160_s25, 1  ;;  %s2177_s0 = sld [smem:[#allocation22_spill]] }
  0x2c   : > { %2176 = sst [smem:[#allocation21_spill]] %s1864_s29  ;;  %s251_s10 = scalar_lea.vmem [#allocation3], %s1372_s30 }
  0x2d   : > { %s259_s2 = sshll.u32 %s251_s10, 4  ;;  %p1874_p2 = pnand %p1436_p5, %p1848_p13  ;;  %s260_s2 = int_to_ptr.vmem [resolvable:$true] %s259_s2 }
  0x2e   : > { %s1880_s13 = scalar_lea.sflag [#allocation4], %s2161_s17  ;;  %s1532_s16 = scalar_lea.vmem %s260_s2, 32 }
  0x2f   : > { %p2163_p9 = pneg %p1874_p2  ;;  %p1533_p10 = scmp.ne.s32.totalorder %s260_s2, %s1532_s16 }
  0x30   : > { %s1730_s10 = smov [#allocation3]  }
  0x31   : > { %s257_s9 = scalar_lea.hbm %s2177_s0, %s1393_s8  ;;  %p1535_p0 = pnand %p1533_p10, %p2163_p9 }
  0x32   : > { %s1537_s14 = sshll.u32 %s1730_s10, 4  ;;  %s1538_s14 = int_to_ptr.vmem [resolvable:$false] %s1537_s14 }
  0x33   : > { %p1536_p7 = pneg %p1535_p0  ;;  %s1539_s11 = scalar_lea.vmem %s1538_s14, 64 }
  0x34   : > { %p1540_p13 = scmp.lt.s32.totalorder %s260_s2, %s1538_s14  ;;  %p1541_p5 = scmp.lt.s32.totalorder %s1539_s11, %s1532_s16 }
  0x36   : > { %p1542_p1 = por %p1541_p5, %p1540_p13 }
  0x38   : > { %p1543_p12 = pnand %p1542_p1, %p1536_p7 }
  0x3a   : > { %1546 = shalt.err (!%p1543_p12)
}
  0x3b   : > { %1423 = dma.hbm_to_vmem [thread:$0]  (!%p1874_p2), %s257_s9, 32, %s260_s2, %s1880_s13  }
  0x3c   : > { %s1893_s17 = scalar_lea.hbm %s2150_s1, %s1393_s8  ;;  %s1731_s0 = smov [#allocation9]  }
  0x3d   : > { %s233_s7 = sshll.u32 %s1731_s0, 4  ;;  %s270_s10 = scalar_lea.vmem [#allocation6], %s1372_s30  ;;  %s234_s7 = int_to_ptr.vmem [resolvable:$true] %s233_s7 }
  0x3e   : > { %s278_s29 = sshll.u32 %s270_s10, 4  ;;  %s1558_s16 = scalar_lea.vmem %s234_s7, 8192  ;;  %s279_s29 = int_to_ptr.vmem [resolvable:$true] %s278_s29 }
  0x3f   : > { %p1559_p10 = scmp.ne.s32.totalorder %s234_s7, %s1558_s16  ;;  %p2179_p1 = pneg %p1824_p11 }
  0x40   : > { %p1566_p7 = scmp.lt.s32.totalorder %s234_s7, %s234_s7  ;;  %p1567_p13 = scmp.lt.s32.totalorder %s1558_s16, %s1558_s16 }
  0x41   : > { %p1561_p12 = pnand %p1559_p10, %p2179_p1 }
  0x42   : > { %p1568_p5 = por %p1567_p13, %p1566_p7 }
  0x43   : > { %p1562_p0 = pneg %p1561_p12 }
  0x45   : > { %p1569_p9 = pnand %p1568_p5, %p1562_p0 }
  0x47   : > { %1572 = shalt.err (!%p1569_p9)
}
  0x48   : > { %s2180_s2 = smov 16   ;;  %s2181_s9 = smov 256  }
  0x49   : > { %1419 = dma.hbm_to_vmem [thread:$0]  (!%p1824_p11), %s2152_s3, 8192, %s234_s7, [#allocation10], %s2181_s9, %s2181_s9, %s2180_s2  }
  0x4a   : > { %s2182_s30 = sand.u32 1, %s1725_s23   ;;  %s1586_s14 = scalar_lea.vmem %s279_s29, 32 }
  0x4b   : > { %s267_s8 = scalar_lea.sflag [#allocation7], %s2182_s30  ;;  %p1587_p10 = scmp.ne.s32.totalorder %s279_s29, %s1586_s14 }
  0x4c   : > { %p2183_p1 = pneg %p1874_p2  ;;  %s1732_s11 = smov [#allocation6]  }
  0x4d   : > { %s1591_s12 = sshll.u32 %s1732_s11, 4  ;;  %s1592_s12 = int_to_ptr.vmem [resolvable:$false] %s1591_s12 }
  0x4e   : > { %p1589_p12 = pnand %p1587_p10, %p2183_p1  ;;  %s1593_s6 = scalar_lea.vmem %s1592_s12, 64 }
  0x4f   : > { %p1594_p9 = scmp.lt.s32.totalorder %s279_s29, %s1592_s12  ;;  %p1595_p7 = scmp.lt.s32.totalorder %s1593_s6, %s1586_s14 }
  0x50   : > { %p1590_p0 = pneg %p1589_p12 }
  0x51   : > { %p1596_p13 = por %p1595_p7, %p1594_p9 }
  0x53   : > { %p1597_p5 = pnand %p1596_p13, %p1590_p0 }
  0x55   : > { %1600 = shalt.err (!%p1597_p5)
}
  0x56   : > { %1426 = dma.hbm_to_vmem [thread:$0]  (!%p1874_p2), %s1893_s17, 32, %s279_s29, %s267_s8  }
  0x57   : > { %s2184_s7 = sand.u32 1, %s1713_s20   ;;  %s1395_s16 = sshll.u32 %s1721_s22, 7 }
  0x58   : > { %s1378_s10 = sshll.u32 %s2184_s7, 3  ;;  %s297_s0 = scalar_lea.hbm %s2153_s4, %s1395_s16 }
  0x59   : > { %s289_s25 = scalar_lea.vmem [#allocation11], %s1378_s10  ;;  %p2185_p10 = pmov %p2183_p1 }
  0x5a   : > { %s299_s30 = sshll.u32 %s289_s25, 4  ;;  %s1733_s11 = smov [#allocation11]   ;;  %s300_s30 = int_to_ptr.vmem [resolvable:$true] %s299_s30 }
  0x5b   : > { %s1614_s14 = scalar_lea.vmem %s300_s30, 128  ;;  %s1619_s12 = sshll.u32 %s1733_s11, 4  ;;  %s1620_s12 = int_to_ptr.vmem [resolvable:$false] %s1619_s12 }
  0x5c   : > { %p1615_p11 = scmp.ne.s32.totalorder %s300_s30, %s1614_s14  ;;  %s1621_s17 = scalar_lea.vmem %s1620_s12, 256 }
  0x5d   : > { %p1622_p0 = scmp.lt.s32.totalorder %s300_s30, %s1620_s12  ;;  %p1623_p9 = scmp.lt.s32.totalorder %s1621_s17, %s1614_s14 }
  0x5e   : > { %p1617_p1 = pnand %p1615_p11, %p2185_p10 }
  0x5f   : > { %p1624_p7 = por %p1623_p9, %p1622_p0 }
  0x60   : > { %p1618_p12 = pneg %p1617_p1 }
  0x62   : > { %p1625_p13 = pnand %p1624_p7, %p1618_p12 }
  0x64   : > { %1628 = shalt.err (!%p1625_p13)
}
  0x65   : > { %1429 = dma.hbm_to_vmem [thread:$0]  (!%p1874_p2), %s297_s0, 128, %s300_s30, %s1880_s13  }
  0x66   : > { %308 = sbr.rel (%p1815_p8) target bundleno = 500 (0x1f4), region = 40  ;;  %s310_s29 = sand.u32 (!%p1815_p8), 1, %s1796_s24  }
  0x67   : > { %s1930_s8 = sand.u32 (!%p1815_p8), 1, %s1709_s19   ;;  %s311_s7 = scalar_lea.sflag (!%p1815_p8), [#allocation4], %s310_s29 }
  0x68   : > { %s1382_s6 = sshll.u32 (!%p1815_p8), %s1930_s8, 1 }
  0x69   : > { %s314_s10 = scalar_lea.vmem (!%p1815_p8), [#allocation3], %s1382_s6 }
  0x6b   : > { %1680 = dma.done.wait (%p1805_p4), %s311_s7, 32  }
  0x6c   : > { %1682 = vsyncadd (%p1805_p4), %s311_s7, 4294967264  ;;  %s320_s27 = scalar_lea.sflag [#allocation7], %s310_s29  ;;  %s323_s13 = scalar_lea.vmem [#allocation6], %s1382_s6 }
  0x6d   : > { %1684 = dma.done.wait (%p1805_p4), %s320_s27, 32  }
  0x6e   : > { %1686 = vsyncadd (%p1805_p4), %s320_s27, 4294967264  ;;  %p2186_p8 = scmp.eq.s32.totalorder %s1796_s24, 0 }
  0x70   : > { %1688 = dma.done.wait (%p2186_p8), [#allocation7], 8192   ;;  %p2187_p2 = pmov %p2186_p8 }
  0x72   : > { %1690 = vsyncadd (%p2187_p2), [#allocation7], 4294959104  ;;  %p2188_p5 = pmov %p2187_p2 }
  0x73   : > { %p2189_p11 = pmov %p2187_p2 }
  0x74   : > { %1692 = dma.done.wait (%p2188_p5), [#allocation10], 8192  }
  0x75   : > { %1694 = vsyncadd (%p2189_p11), [#allocation10], 4294959104  ;;  %s1386_s28 = sshll.u32 %s1930_s8, 3 }
  0x76   : > { %s1952_s16 = scalar_lea.vmem [#allocation11], %s1386_s28 }
  0x77   : > { %1696 = dma.done.wait (%p1805_p4), %s311_s7, 128  }
  0x78   : > { %1698 = vsyncadd (%p1805_p4), %s311_s7, 4294967168  ;;  %v516_v0 = vlaneseq  ;;  %v414_v4 = vld [vmem:[#allocation8 + $0xe8] sm:$0xff]  ;;  %v416_v5 = vld [vmem:[#allocation8 + $0xf8] sm:$0xff]  ;;  %s1396_s24 = sshll.u32 %s1717_s21, 7  ;;  %s376_s26 = scalar_lea.vmem [#allocation12], %s1386_s28 }
  0x79   : > { %v478_v6 = vld [vmem:[#allocation9 + $0xe8] sm:$0xff]  ;;  %v480_v7 = vld [vmem:[#allocation9 + $0xf8] sm:$0xff]  ;;  %v413_v12 = vld [vmem:[#allocation8 + $0xe0] sm:$0xff]  ;;  %s1219_s2 = sshll.u32 %s376_s26, 4  ;;  %s2101_s25 = scalar_lea.hbm %s2154_s5, %s1396_s24  ;;  %s2103_s2 = int_to_ptr.vmem [resolvable:$true] %s1219_s2 }
  0x7a   : > { %v517_v1 = vshrl.u32 %v516_v0, 7  ;;  %v513_v8 = vld [vmem:[%s314_s10] sm:$0x3]  ;;  %v514_v9 = vld [vmem:[%s323_s13] sm:$0x3]  ;;  %v415_v13 = vld [vmem:[#allocation8 + $0xf0] sm:$0xff] }
  0x7b   : > { %v477_v14 = vld [vmem:[#allocation9 + $0xe0] sm:$0xff]  ;;  %v479_v17 = vld [vmem:[#allocation9 + $0xf0] sm:$0xff]  ;;  %v410_v18 = vld [vmem:[#allocation8 + $0xc8] sm:$0xff]  ;;  %s1205_s30 = scalar_lea.sflag [#allocation5], %s1930_s8  ;;  %s1629_s21 = scalar_lea.vmem %s2103_s2, 128 }
  0x7c   : > { %v522_v2 = vsub.s32 1, %v517_v1  ;;  %v518_v3 = vsub.s32 0, %v517_v1  ;;  %v412_v23 = vld [vmem:[#allocation8 + $0xd8] sm:$0xff]  ;;  %v474_v48 = vld [vmem:[#allocation9 + $0xc8] sm:$0xff]  ;;  %v409_v54 = vld [vmem:[#allocation8 + $0xc0] sm:$0xff]  ;;  %p1630_p4 = scmp.ne.s32.totalorder %s2103_s2, %s1629_s21  ;;  %s1734_s14 = smov [#allocation12]  }
  0x7d   : > { %v476_v49 = vld [vmem:[#allocation9 + $0xd8] sm:$0xff]  ;;  %v411_v63 = vld [vmem:[#allocation8 + $0xd0] sm:$0xff]  ;;  %s1633_s11 = sshll.u32 %s1734_s14, 4  ;;  %s1634_s11 = int_to_ptr.vmem [resolvable:$false] %s1633_s11 }
  0x7e   : > { %v1958_v10 = vrot.slane %v513_v8, %v522_v2  ;;  %v1960_v11 = vrot.slane %v514_v9, %v522_v2  ;;  %v1962_v15 = vrot.slane %v513_v8, %v518_v3  ;;  %v1964_v16 = vrot.slane %v514_v9, %v518_v3  ;;  %v473_v3 = vld [vmem:[#allocation9 + $0xc0] sm:$0xff]  ;;  %v475_v9 = vld [vmem:[#allocation9 + $0xd0] sm:$0xff]  ;;  %p1631_p10 = pnand %p1630_p4, %p1854_p3  ;;  %s1635_s12 = scalar_lea.vmem %s1634_s11, 256 }
  0x7f   : > { %p1636_p12 = scmp.lt.s32.totalorder %s2103_s2, %s1634_s11  ;;  %p1637_p0 = scmp.lt.s32.totalorder %s1635_s12, %s1629_s21 }
  0x80   : > { %v555_v19 = vsub.f32 %v414_v4, %v1958_v10  ;;  %v557_v20 = vsub.f32 %v416_v5, %v1958_v10  ;;  %v822_v21 = vsub.f32 %v478_v6, %v1960_v11  ;;  %v824_v22 = vsub.f32 %v480_v7, %v1960_v11  ;;  %p1632_p1 = pneg %p1631_p10 }
  0x81   : > { %v554_v24 = vsub.f32 %v413_v12, %v1962_v15  ;;  %v556_v25 = vsub.f32 %v415_v13, %v1962_v15  ;;  %v821_v26 = vsub.f32 %v477_v14, %v1964_v16  ;;  %v823_v27 = vsub.f32 %v479_v17, %v1964_v16  ;;  %v406_v12 = vld [vmem:[#allocation8 + $0xa8] sm:$0xff]  ;;  %p1638_p9 = por %p1637_p0, %p1636_p12 }
  0x82   : > { %v619_v28 = vand.u32 2147483647, %v555_v19  ;;  %v621_v29 = vand.u32 2147483647, %v557_v20  ;;  %v886_v30 = vand.u32 2147483647, %v822_v21  ;;  %v551_v31 = vsub.f32 %v410_v18, %v1958_v10 }
  0x83   : > { %v888_v32 = vand.u32 2147483647, %v824_v22  ;;  %v618_v33 = vand.u32 2147483647, %v554_v24  ;;  %v620_v34 = vand.u32 2147483647, %v556_v25  ;;  %v553_v35 = vsub.f32 %v412_v23, %v1958_v10  ;;  %p1639_p7 = pnand %p1638_p9, %p1632_p1 }
  0x84   : > { %v683_v36 = vsub.f32 1.0, %v619_v28  ;;  %v685_v37 = vsub.f32 1.0, %v621_v29  ;;  %v950_v38 = vsub.f32 1.0, %v886_v30  ;;  %v885_v39 = vand.u32 2147483647, %v821_v26  ;;  %v408_v19 = vld [vmem:[#allocation8 + $0xb8] sm:$0xff] }
  0x85   : > { %v952_v40 = vsub.f32 1.0, %v888_v32  ;;  %v682_v41 = vsub.f32 1.0, %v618_v33  ;;  %v684_v42 = vsub.f32 1.0, %v620_v34  ;;  %v887_v43 = vand.u32 2147483647, %v823_v27  ;;  %v472_v32 = vld [vmem:[#allocation9 + $0xb8] sm:$0xff] }
  0x86   : > { %v747_v44 = vmax.f32 %v683_v36, 0.0  ;;  %v749_v45 = vmax.f32 %v685_v37, 0.0  ;;  %v1014_v46 = vmax.f32 %v950_v38, 0.0  ;;  %v949_v47 = vsub.f32 1.0, %v885_v39 }
  0x87   : > { %v1016_v50 = vmax.f32 %v952_v40, 0.0  ;;  %v746_v51 = vmax.f32 %v682_v41, 0.0  ;;  %v748_v52 = vmax.f32 %v684_v42, 0.0  ;;  %v951_v53 = vsub.f32 1.0, %v887_v43  ;;  %v405_v42 = vld [vmem:[#allocation8 + $0xa0] sm:$0xff] }
  0x88   : > { %v1078_v55 = vmul.f32 %v1014_v46, %v747_v44  ;;  %v1013_v56 = vmax.f32 %v949_v47, 0.0  ;;  %v615_v57 = vand.u32 2147483647, %v551_v31  ;;  %v617_v58 = vand.u32 2147483647, %v553_v35  ;;  %v470_v31 = vld [vmem:[#allocation9 + $0xa8] sm:$0xff] }
  0x89   : > { %v1080_v59 = vmul.f32 %v1016_v50, %v749_v45  ;;  %v1015_v60 = vmax.f32 %v951_v53, 0.0  ;;  %v818_v61 = vsub.f32 %v474_v48, %v1960_v11  ;;  %v820_v62 = vsub.f32 %v476_v49, %v1960_v11  ;;  %v407_v47 = vld [vmem:[#allocation8 + $0xb0] sm:$0xff] }
  0x8a   : > { %v1077_v0 = vmul.f32 %v1013_v56, %v746_v51  ;;  %v679_v1 = vsub.f32 1.0, %v615_v57  ;;  %v681_v2 = vsub.f32 1.0, %v617_v58  ;;  %v550_v4 = vsub.f32 %v409_v54, %v1962_v15  ;;  %v471_v56 = vld [vmem:[#allocation9 + $0xb0] sm:$0xff]  ;;  %v402_v58 = vld [vmem:[#allocation8 + $0x88] sm:$0xff] }
  0x8b   : > { %v1128_v5 = vpack.c.bf16 %v1080_v59, %v1078_v55  ;;  %v1079_v6 = vmul.f32 %v1015_v60, %v748_v52  ;;  %v882_v7 = vand.u32 2147483647, %v818_v61  ;;  %v884_v8 = vand.u32 2147483647, %v820_v62  ;;  %v469_v52 = vld [vmem:[#allocation9 + $0xa0] sm:$0xff] }
  0x8c   : > { %v743_v13 = vmax.f32 %v679_v1, 0.0  ;;  %v745_v14 = vmax.f32 %v681_v2, 0.0  ;;  %v552_v17 = vsub.f32 %v411_v63, %v1962_v15  ;;  %v614_v18 = vand.u32 2147483647, %v550_v4 }
  0x8d   : > { %1151 = vmatprep.subr.bf16.mxu0 %v1128_v5  ;;  %v1127_v20 = vpack.c.bf16 %v1079_v6, %v1077_v0  ;;  %v946_v21 = vsub.f32 1.0, %v882_v7  ;;  %v948_v22 = vsub.f32 1.0, %v884_v8  ;;  %v817_v23 = vsub.f32 %v473_v3, %v1964_v16  ;;  %v404_v3 = vld [vmem:[#allocation8 + $0x98] sm:$0xff] }
  0x8e   : > { %v616_v24 = vand.u32 2147483647, %v552_v17  ;;  %v678_v25 = vsub.f32 1.0, %v614_v18  ;;  %v819_v26 = vsub.f32 %v475_v9, %v1964_v16  ;;  %v547_v27 = vsub.f32 %v406_v12, %v1958_v10 }
  0x8f   : > { %1152 = vmatpush1.bf16.msra.mxu0 %v1127_v20  ;;  %v1010_v28 = vmax.f32 %v946_v21, 0.0  ;;  %v1012_v29 = vmax.f32 %v948_v22, 0.0  ;;  %v881_v30 = vand.u32 2147483647, %v817_v23  ;;  %v549_v33 = vsub.f32 %v408_v19, %v1958_v10  ;;  %v466_v19 = vld [vmem:[#allocation9 + $0x88] sm:$0xff]  ;;  %v468_v20 = vld [vmem:[#allocation9 + $0x98] sm:$0xff] }
  0x90   : > { %v680_v34 = vsub.f32 1.0, %v616_v24  ;;  %v742_v35 = vmax.f32 %v678_v25, 0.0  ;;  %v883_v36 = vand.u32 2147483647, %v819_v26  ;;  %v611_v37 = vand.u32 2147483647, %v547_v27 }
  0x91   : > { %v1074_v38 = vmul.f32 %v1010_v28, %v743_v13  ;;  %v1076_v39 = vmul.f32 %v1012_v29, %v745_v14  ;;  %v945_v40 = vsub.f32 1.0, %v881_v30  ;;  %v613_v41 = vand.u32 2147483647, %v549_v33  ;;  %v401_v26 = vld [vmem:[#allocation8 + $0x80] sm:$0xff] }
  0x92   : > { %v744_v43 = vmax.f32 %v680_v34, 0.0  ;;  %v947_v44 = vsub.f32 1.0, %v883_v36  ;;  %v675_v45 = vsub.f32 1.0, %v611_v37  ;;  %v814_v46 = vsub.f32 %v470_v31, %v1960_v11 }
  0x93   : > { %v1126_v48 = vpack.c.bf16 %v1076_v39, %v1074_v38  ;;  %v1009_v49 = vmax.f32 %v945_v40, 0.0  ;;  %v677_v50 = vsub.f32 1.0, %v613_v41  ;;  %v816_v51 = vsub.f32 %v472_v32, %v1960_v11  ;;  %v465_v39 = vld [vmem:[#allocation9 + $0x80] sm:$0xff]  ;;  %v467_v40 = vld [vmem:[#allocation9 + $0x90] sm:$0xff] }
  0x94   : > { %v1011_v53 = vmax.f32 %v947_v44, 0.0  ;;  %v739_v54 = vmax.f32 %v675_v45, 0.0  ;;  %v878_v55 = vand.u32 2147483647, %v814_v46  ;;  %v546_v57 = vsub.f32 %v405_v42, %v1962_v15  ;;  %v398_v46 = vld [vmem:[#allocation8 + $0x68] sm:$0xff] }
  0x95   : > { %1153 = vmatprep.subr.bf16.mxu0 %v1126_v48  ;;  %v1073_v59 = vmul.f32 %v1009_v49, %v742_v35  ;;  %v741_v60 = vmax.f32 %v677_v50, 0.0  ;;  %v880_v61 = vand.u32 2147483647, %v816_v51  ;;  %v548_v62 = vsub.f32 %v407_v47, %v1962_v15  ;;  %v403_v35 = vld [vmem:[#allocation8 + $0x90] sm:$0xff] }
  0x96   : > { %v1075_v63 = vmul.f32 %v1011_v53, %v744_v43  ;;  %v942_v0 = vsub.f32 1.0, %v878_v55  ;;  %v610_v1 = vand.u32 2147483647, %v546_v57  ;;  %v813_v2 = vsub.f32 %v469_v52, %v1964_v16  ;;  %v400_v55 = vld [vmem:[#allocation8 + $0x78] sm:$0xff] }
  0x97   : > { %v944_v4 = vsub.f32 1.0, %v880_v61  ;;  %v612_v5 = vand.u32 2147483647, %v548_v62  ;;  %v815_v6 = vsub.f32 %v471_v56, %v1964_v16  ;;  %v543_v7 = vsub.f32 %v402_v58, %v1958_v10 }
  0x98   : > { %v1125_v8 = vpack.c.bf16 %v1075_v63, %v1073_v59  ;;  %v1006_v9 = vmax.f32 %v942_v0, 0.0  ;;  %v674_v12 = vsub.f32 1.0, %v610_v1  ;;  %v877_v13 = vand.u32 2147483647, %v813_v2  ;;  %v462_v59 = vld [vmem:[#allocation9 + $0x68] sm:$0xff] }
  0x99   : > { %v1008_v14 = vmax.f32 %v944_v4, 0.0  ;;  %v676_v17 = vsub.f32 1.0, %v612_v5  ;;  %v879_v18 = vand.u32 2147483647, %v815_v6  ;;  %v545_v21 = vsub.f32 %v404_v3, %v1958_v10  ;;  %v464_v3 = vld [vmem:[#allocation9 + $0x78] sm:$0xff] }
  0x9a   : > { %1154 = vmatpush1.bf16.msra.mxu0 %v1125_v8  ;;  %v1070_v22 = vmul.f32 %v1006_v9, %v739_v54  ;;  %v738_v23 = vmax.f32 %v674_v12, 0.0  ;;  %v941_v24 = vsub.f32 1.0, %v877_v13  ;;  %v607_v25 = vand.u32 2147483647, %v543_v7  ;;  %v397_v12 = vld [vmem:[#allocation8 + $0x60] sm:$0xff] }
  0x9b   : > { %v1072_v27 = vmul.f32 %v1008_v14, %v741_v60  ;;  %v740_v28 = vmax.f32 %v676_v17, 0.0  ;;  %v943_v29 = vsub.f32 1.0, %v879_v18  ;;  %v609_v30 = vand.u32 2147483647, %v545_v21 }
  0x9c   : > { %v1005_v31 = vmax.f32 %v941_v24, 0.0  ;;  %v671_v32 = vsub.f32 1.0, %v607_v25  ;;  %v810_v33 = vsub.f32 %v466_v19, %v1960_v11  ;;  %v812_v34 = vsub.f32 %v468_v20, %v1960_v11  ;;  %v399_v19 = vld [vmem:[#allocation8 + $0x70] sm:$0xff]  ;;  %v461_v24 = vld [vmem:[#allocation9 + $0x60] sm:$0xff] }
  0x9d   : > { %v1124_v36 = vpack.c.bf16 %v1072_v27, %v1070_v22  ;;  %v1007_v37 = vmax.f32 %v943_v29, 0.0  ;;  %v673_v38 = vsub.f32 1.0, %v609_v30  ;;  %v542_v41 = vsub.f32 %v401_v26, %v1962_v15 }
  0x9e   : > { %v1069_v42 = vmul.f32 %v1005_v31, %v738_v23  ;;  %v735_v43 = vmax.f32 %v671_v32, 0.0  ;;  %v874_v44 = vand.u32 2147483647, %v810_v33  ;;  %v876_v45 = vand.u32 2147483647, %v812_v34  ;;  %v394_v34 = vld [vmem:[#allocation8 + $0x48] sm:$0xff] }
  0x9f   : > { %1155 = vmatprep.subr.bf16.mxu0 %v1124_v36  ;;  %v1071_v47 = vmul.f32 %v1007_v37, %v740_v28  ;;  %v737_v48 = vmax.f32 %v673_v38, 0.0  ;;  %v544_v49 = vsub.f32 %v403_v35, %v1962_v15  ;;  %v606_v50 = vand.u32 2147483647, %v542_v41  ;;  %v463_v28 = vld [vmem:[#allocation9 + $0x70] sm:$0xff] }
  0xa0   : > { %v938_v51 = vsub.f32 1.0, %v874_v44  ;;  %v940_v52 = vsub.f32 1.0, %v876_v45  ;;  %v809_v53 = vsub.f32 %v465_v39, %v1964_v16  ;;  %v811_v54 = vsub.f32 %v467_v40, %v1964_v16  ;;  %v396_v39 = vld [vmem:[#allocation8 + $0x58] sm:$0xff] }
  0xa1   : > { %v1123_v56 = vpack.c.bf16 %v1071_v47, %v1069_v42  ;;  %v608_v57 = vand.u32 2147483647, %v544_v49  ;;  %v670_v58 = vsub.f32 1.0, %v606_v50  ;;  %v539_v60 = vsub.f32 %v398_v46, %v1958_v10 }
  0xa2   : > { %v1002_v61 = vmax.f32 %v938_v51, 0.0  ;;  %v1004_v62 = vmax.f32 %v940_v52, 0.0  ;;  %v873_v63 = vand.u32 2147483647, %v809_v53  ;;  %v875_v0 = vand.u32 2147483647, %v811_v54 }
  0xa3   : > { %1156 = vmatpush1.bf16.msra.mxu0 %v1123_v56  ;;  %v672_v1 = vsub.f32 1.0, %v608_v57  ;;  %v734_v2 = vmax.f32 %v670_v58, 0.0  ;;  %v541_v4 = vsub.f32 %v400_v55, %v1958_v10  ;;  %v603_v5 = vand.u32 2147483647, %v539_v60  ;;  %v458_v51 = vld [vmem:[#allocation9 + $0x48] sm:$0xff]  ;;  %v460_v52 = vld [vmem:[#allocation9 + $0x58] sm:$0xff] }
  0xa4   : > { %v1066_v6 = vmul.f32 %v1002_v61, %v735_v43  ;;  %v1068_v7 = vmul.f32 %v1004_v62, %v737_v48  ;;  %v937_v8 = vsub.f32 1.0, %v873_v63  ;;  %v939_v9 = vsub.f32 1.0, %v875_v0  ;;  %v393_v58 = vld [vmem:[#allocation8 + $0x40] sm:$0xff] }
  0xa5   : > { %v736_v13 = vmax.f32 %v672_v1, 0.0  ;;  %v605_v14 = vand.u32 2147483647, %v541_v4  ;;  %v667_v17 = vsub.f32 1.0, %v603_v5  ;;  %v806_v18 = vsub.f32 %v462_v59, %v1960_v11 }
  0xa6   : > { %v1122_v20 = vpack.c.bf16 %v1068_v7, %v1066_v6  ;;  %v1001_v21 = vmax.f32 %v937_v8, 0.0  ;;  %v1003_v22 = vmax.f32 %v939_v9, 0.0  ;;  %v808_v23 = vsub.f32 %v464_v3, %v1960_v11  ;;  %v395_v3 = vld [vmem:[#allocation8 + $0x50] sm:$0xff]  ;;  %v457_v7 = vld [vmem:[#allocation9 + $0x40] sm:$0xff] }
  0xa7   : > { %v669_v25 = vsub.f32 1.0, %v605_v14  ;;  %v731_v26 = vmax.f32 %v667_v17, 0.0  ;;  %v870_v27 = vand.u32 2147483647, %v806_v18  ;;  %v538_v29 = vsub.f32 %v397_v12, %v1962_v15  ;;  %v459_v8 = vld [vmem:[#allocation9 + $0x50] sm:$0xff]  ;;  %v390_v18 = vld [vmem:[#allocation8 + $0x28] sm:$0xff] }
  0xa8   : > { %1157 = vmatprep.subr.bf16.mxu0 %v1122_v20  ;;  %v1065_v30 = vmul.f32 %v1001_v21, %v734_v2  ;;  %v1067_v31 = vmul.f32 %v1003_v22, %v736_v13  ;;  %v872_v32 = vand.u32 2147483647, %v808_v23  ;;  %v540_v33 = vsub.f32 %v399_v19, %v1962_v15 }
  0xa9   : > { %v733_v35 = vmax.f32 %v669_v25, 0.0  ;;  %v934_v36 = vsub.f32 1.0, %v870_v27  ;;  %v602_v37 = vand.u32 2147483647, %v538_v29  ;;  %v805_v38 = vsub.f32 %v461_v24, %v1964_v16  ;;  %v392_v27 = vld [vmem:[#allocation8 + $0x38] sm:$0xff] }
  0xaa   : > { %v1121_v40 = vpack.c.bf16 %v1067_v31, %v1065_v30  ;;  %v936_v41 = vsub.f32 1.0, %v872_v32  ;;  %v604_v42 = vand.u32 2147483647, %v540_v33  ;;  %v807_v43 = vsub.f32 %v463_v28, %v1964_v16  ;;  %v454_v31 = vld [vmem:[#allocation9 + $0x28] sm:$0xff] }
  0xab   : > { %v998_v44 = vmax.f32 %v934_v36, 0.0  ;;  %v666_v45 = vsub.f32 1.0, %v602_v37  ;;  %v869_v46 = vand.u32 2147483647, %v805_v38  ;;  %v535_v47 = vsub.f32 %v394_v34, %v1958_v10 }
  0xac   : > { %1158 = vmatpush1.bf16.msra.mxu0 %v1121_v40  ;;  %v1000_v48 = vmax.f32 %v936_v41, 0.0  ;;  %v668_v49 = vsub.f32 1.0, %v604_v42  ;;  %v871_v50 = vand.u32 2147483647, %v807_v43  ;;  %v537_v53 = vsub.f32 %v396_v39, %v1958_v10  ;;  %v456_v39 = vld [vmem:[#allocation9 + $0x38] sm:$0xff] }
  0xad   : > { %v1062_v54 = vmul.f32 %v998_v44, %v731_v26  ;;  %v730_v55 = vmax.f32 %v666_v45, 0.0  ;;  %v933_v56 = vsub.f32 1.0, %v869_v46  ;;  %v599_v57 = vand.u32 2147483647, %v535_v47  ;;  %v389_v46 = vld [vmem:[#allocation8 + $0x20] sm:$0xff] }
  0xae   : > { %v1064_v59 = vmul.f32 %v1000_v48, %v733_v35  ;;  %v732_v60 = vmax.f32 %v668_v49, 0.0  ;;  %v935_v61 = vsub.f32 1.0, %v871_v50  ;;  %v601_v62 = vand.u32 2147483647, %v537_v53 }
  0xaf   : > { %v997_v63 = vmax.f32 %v933_v56, 0.0  ;;  %v663_v0 = vsub.f32 1.0, %v599_v57  ;;  %v802_v1 = vsub.f32 %v458_v51, %v1960_v11  ;;  %v804_v2 = vsub.f32 %v460_v52, %v1960_v11  ;;  %v391_v51 = vld [vmem:[#allocation8 + $0x30] sm:$0xff]  ;;  %v453_v56 = vld [vmem:[#allocation9 + $0x20] sm:$0xff] }
  0xb0   : > { %v1120_v4 = vpack.c.bf16 %v1064_v59, %v1062_v54  ;;  %v999_v5 = vmax.f32 %v935_v61, 0.0  ;;  %v665_v6 = vsub.f32 1.0, %v601_v62  ;;  %v534_v9 = vsub.f32 %v393_v58, %v1962_v15 }
  0xb1   : > { %v1061_v12 = vmul.f32 %v997_v63, %v730_v55  ;;  %v727_v13 = vmax.f32 %v663_v0, 0.0  ;;  %v866_v14 = vand.u32 2147483647, %v802_v1  ;;  %v868_v17 = vand.u32 2147483647, %v804_v2  ;;  %v386_v2 = vld [vmem:[#allocation8 + $0x8] sm:$0xff] }
  0xb2   : > { %1159 = vmatprep.subr.bf16.mxu0 %v1120_v4  ;;  %v1063_v19 = vmul.f32 %v999_v5, %v732_v60  ;;  %v729_v20 = vmax.f32 %v665_v6, 0.0  ;;  %v536_v21 = vsub.f32 %v395_v3, %v1962_v15  ;;  %v598_v22 = vand.u32 2147483647, %v534_v9  ;;  %v455_v60 = vld [vmem:[#allocation9 + $0x30] sm:$0xff] }
  0xb3   : > { %v930_v23 = vsub.f32 1.0, %v866_v14  ;;  %v932_v24 = vsub.f32 1.0, %v868_v17  ;;  %v801_v25 = vsub.f32 %v457_v7, %v1964_v16  ;;  %v803_v26 = vsub.f32 %v459_v8, %v1964_v16  ;;  %v388_v7 = vld [vmem:[#allocation8 + $0x18] sm:$0xff] }
  0xb4   : > { %v1119_v28 = vpack.c.bf16 %v1063_v19, %v1061_v12  ;;  %v600_v29 = vand.u32 2147483647, %v536_v21  ;;  %v662_v30 = vsub.f32 1.0, %v598_v22  ;;  %v531_v32 = vsub.f32 %v390_v18, %v1958_v10 }
  0xb5   : > { %v994_v33 = vmax.f32 %v930_v23, 0.0  ;;  %v996_v34 = vmax.f32 %v932_v24, 0.0  ;;  %v865_v35 = vand.u32 2147483647, %v801_v25  ;;  %v867_v36 = vand.u32 2147483647, %v803_v26 }
  0xb6   : > { %1160 = vmatpush1.bf16.msra.mxu0 %v1119_v28  ;;  %v664_v37 = vsub.f32 1.0, %v600_v29  ;;  %v726_v38 = vmax.f32 %v662_v30, 0.0  ;;  %v533_v40 = vsub.f32 %v392_v27, %v1958_v10  ;;  %v595_v41 = vand.u32 2147483647, %v531_v32  ;;  %v450_v23 = vld [vmem:[#allocation9 + $0x8] sm:$0xff]  ;;  %v452_v24 = vld [vmem:[#allocation9 + $0x18] sm:$0xff] }
  0xb7   : > { %v1058_v42 = vmul.f32 %v994_v33, %v727_v13  ;;  %v1060_v43 = vmul.f32 %v996_v34, %v729_v20  ;;  %v929_v44 = vsub.f32 1.0, %v865_v35  ;;  %v931_v45 = vsub.f32 1.0, %v867_v36  ;;  %v385_v30 = vld [vmem:[#allocation8] sm:$0xff] }
  0xb8   : > { %v728_v47 = vmax.f32 %v664_v37, 0.0  ;;  %v597_v48 = vand.u32 2147483647, %v533_v40  ;;  %v659_v49 = vsub.f32 1.0, %v595_v41  ;;  %v798_v50 = vsub.f32 %v454_v31, %v1960_v11 }
  0xb9   : > { %v1118_v52 = vpack.c.bf16 %v1060_v43, %v1058_v42  ;;  %v993_v53 = vmax.f32 %v929_v44, 0.0  ;;  %v995_v54 = vmax.f32 %v931_v45, 0.0  ;;  %v800_v55 = vsub.f32 %v456_v39, %v1960_v11  ;;  %v387_v39 = vld [vmem:[#allocation8 + $0x10] sm:$0xff]  ;;  %v449_v43 = vld [vmem:[#allocation9] sm:$0xff] }
  0xba   : > { %v661_v57 = vsub.f32 1.0, %v597_v48  ;;  %v723_v58 = vmax.f32 %v659_v49, 0.0  ;;  %v862_v59 = vand.u32 2147483647, %v798_v50  ;;  %v530_v61 = vsub.f32 %v389_v46, %v1962_v15  ;;  %v451_v44 = vld [vmem:[#allocation9 + $0x10] sm:$0xff]  ;;  %v446_v50 = vld [vmem:[#allocation8 + $0x1e8] sm:$0xff] }
  0xbb   : > { %1161 = vmatprep.subr.bf16.mxu0 %v1118_v52  ;;  %v1057_v62 = vmul.f32 %v993_v53, %v726_v38  ;;  %v1059_v63 = vmul.f32 %v995_v54, %v728_v47  ;;  %v864_v0 = vand.u32 2147483647, %v800_v55  ;;  %v532_v1 = vsub.f32 %v391_v51, %v1962_v15 }
  0xbc   : > { %v725_v3 = vmax.f32 %v661_v57, 0.0  ;;  %v926_v4 = vsub.f32 1.0, %v862_v59  ;;  %v594_v5 = vand.u32 2147483647, %v530_v61  ;;  %v797_v6 = vsub.f32 %v453_v56, %v1964_v16  ;;  %v448_v59 = vld [vmem:[#allocation8 + $0x1f8] sm:$0xff] }
  0xbd   : > { %v1117_v8 = vpack.c.bf16 %v1059_v63, %v1057_v62  ;;  %v928_v9 = vsub.f32 1.0, %v864_v0  ;;  %v596_v12 = vand.u32 2147483647, %v532_v1  ;;  %v799_v13 = vsub.f32 %v455_v60, %v1964_v16  ;;  %v510_v63 = vld [vmem:[#allocation9 + $0x1e8] sm:$0xff] }
  0xbe   : > { %v990_v14 = vmax.f32 %v926_v4, 0.0  ;;  %v658_v17 = vsub.f32 1.0, %v594_v5  ;;  %v861_v18 = vand.u32 2147483647, %v797_v6  ;;  %v527_v19 = vsub.f32 %v386_v2, %v1958_v10 }
  0xbf   : > { %1162 = vmatpush1.bf16.msra.mxu0 %v1117_v8  ;;  %v992_v20 = vmax.f32 %v928_v9, 0.0  ;;  %v660_v21 = vsub.f32 1.0, %v596_v12  ;;  %v863_v22 = vand.u32 2147483647, %v799_v13  ;;  %v529_v25 = vsub.f32 %v388_v7, %v1958_v10  ;;  %v512_v7 = vld [vmem:[#allocation9 + $0x1f8] sm:$0xff] }
  0xc0   : > { %v1054_v26 = vmul.f32 %v990_v14, %v723_v58  ;;  %v722_v27 = vmax.f32 %v658_v17, 0.0  ;;  %v925_v28 = vsub.f32 1.0, %v861_v18  ;;  %v591_v29 = vand.u32 2147483647, %v527_v19  ;;  %v445_v18 = vld [vmem:[#allocation8 + $0x1e0] sm:$0xff] }
  0xc1   : > { %v1056_v31 = vmul.f32 %v992_v20, %v725_v3  ;;  %v724_v32 = vmax.f32 %v660_v21, 0.0  ;;  %v927_v33 = vsub.f32 1.0, %v863_v22  ;;  %v593_v34 = vand.u32 2147483647, %v529_v25 }
  0xc2   : > { %v989_v35 = vmax.f32 %v925_v28, 0.0  ;;  %v655_v36 = vsub.f32 1.0, %v591_v29  ;;  %v794_v37 = vsub.f32 %v450_v23, %v1960_v11  ;;  %v796_v38 = vsub.f32 %v452_v24, %v1960_v11  ;;  %v447_v23 = vld [vmem:[#allocation8 + $0x1f0] sm:$0xff]  ;;  %v509_v28 = vld [vmem:[#allocation9 + $0x1e0] sm:$0xff] }
  0xc3   : > { %v1116_v40 = vpack.c.bf16 %v1056_v31, %v1054_v26  ;;  %v991_v41 = vmax.f32 %v927_v33, 0.0  ;;  %v657_v42 = vsub.f32 1.0, %v593_v34  ;;  %v526_v45 = vsub.f32 %v385_v30, %v1962_v15 }
  0xc4   : > { %v1053_v46 = vmul.f32 %v989_v35, %v722_v27  ;;  %v719_v47 = vmax.f32 %v655_v36, 0.0  ;;  %v858_v48 = vand.u32 2147483647, %v794_v37  ;;  %v860_v49 = vand.u32 2147483647, %v796_v38  ;;  %v442_v38 = vld [vmem:[#allocation8 + $0x1c8] sm:$0xff] }
  0xc5   : > { %1163 = vmatprep.subr.bf16.mxu0 %v1116_v40  ;;  %v1055_v51 = vmul.f32 %v991_v41, %v724_v32  ;;  %v721_v52 = vmax.f32 %v657_v42, 0.0  ;;  %v528_v53 = vsub.f32 %v387_v39, %v1962_v15  ;;  %v590_v54 = vand.u32 2147483647, %v526_v45  ;;  %v511_v32 = vld [vmem:[#allocation9 + $0x1f0] sm:$0xff] }
  0xc6   : > { %v922_v55 = vsub.f32 1.0, %v858_v48  ;;  %v924_v56 = vsub.f32 1.0, %v860_v49  ;;  %v793_v57 = vsub.f32 %v449_v43, %v1964_v16  ;;  %v795_v58 = vsub.f32 %v451_v44, %v1964_v16  ;;  %v444_v43 = vld [vmem:[#allocation8 + $0x1d8] sm:$0xff] }
  0xc7   : > { %v1115_v60 = vpack.c.bf16 %v1055_v51, %v1053_v46  ;;  %v592_v61 = vand.u32 2147483647, %v528_v53  ;;  %v654_v62 = vsub.f32 1.0, %v590_v54  ;;  %v587_v0 = vsub.f32 %v446_v50, %v1958_v10 }
  0xc8   : > { %v986_v1 = vmax.f32 %v922_v55, 0.0  ;;  %v988_v2 = vmax.f32 %v924_v56, 0.0  ;;  %v857_v3 = vand.u32 2147483647, %v793_v57  ;;  %v859_v4 = vand.u32 2147483647, %v795_v58 }
  0xc9   : > { %1164 = vmatpush1.bf16.msra.mxu0 %v1115_v60  ;;  %v656_v5 = vsub.f32 1.0, %v592_v61  ;;  %v718_v6 = vmax.f32 %v654_v62, 0.0  ;;  %v589_v8 = vsub.f32 %v448_v59, %v1958_v10  ;;  %v651_v9 = vand.u32 2147483647, %v587_v0  ;;  %v506_v55 = vld [vmem:[#allocation9 + $0x1c8] sm:$0xff]  ;;  %v508_v56 = vld [vmem:[#allocation9 + $0x1d8] sm:$0xff] }
  0xca   : > { %v1050_v12 = vmul.f32 %v986_v1, %v719_v47  ;;  %v1052_v13 = vmul.f32 %v988_v2, %v721_v52  ;;  %v921_v14 = vsub.f32 1.0, %v857_v3  ;;  %v923_v17 = vsub.f32 1.0, %v859_v4  ;;  %v441_v62 = vld [vmem:[#allocation8 + $0x1c0] sm:$0xff] }
  0xcb   : > { %v720_v19 = vmax.f32 %v656_v5, 0.0  ;;  %v653_v20 = vand.u32 2147483647, %v589_v8  ;;  %v715_v21 = vsub.f32 1.0, %v651_v9  ;;  %v854_v22 = vsub.f32 %v510_v63, %v1960_v11 }
  0xcc   : > { %v1114_v24 = vpack.c.bf16 %v1052_v13, %v1050_v12  ;;  %v985_v25 = vmax.f32 %v921_v14, 0.0  ;;  %v987_v26 = vmax.f32 %v923_v17, 0.0  ;;  %v856_v27 = vsub.f32 %v512_v7, %v1960_v11  ;;  %v443_v7 = vld [vmem:[#allocation8 + $0x1d0] sm:$0xff]  ;;  %v505_v13 = vld [vmem:[#allocation9 + $0x1c0] sm:$0xff] }
  0xcd   : > { %v717_v29 = vsub.f32 1.0, %v653_v20  ;;  %v779_v30 = vmax.f32 %v715_v21, 0.0  ;;  %v918_v31 = vand.u32 2147483647, %v854_v22  ;;  %v586_v33 = vsub.f32 %v445_v18, %v1962_v15  ;;  %v507_v14 = vld [vmem:[#allocation9 + $0x1d0] sm:$0xff]  ;;  %v438_v22 = vld [vmem:[#allocation8 + $0x1a8] sm:$0xff] }
  0xce   : > { %1165 = vmatprep.subr.bf16.mxu0 %v1114_v24  ;;  %v1049_v34 = vmul.f32 %v985_v25, %v718_v6  ;;  %v1051_v35 = vmul.f32 %v987_v26, %v720_v19  ;;  %v920_v36 = vand.u32 2147483647, %v856_v27  ;;  %v588_v37 = vsub.f32 %v447_v23, %v1962_v15 }
  0xcf   : > { %v781_v39 = vmax.f32 %v717_v29, 0.0  ;;  %v982_v40 = vsub.f32 1.0, %v918_v31  ;;  %v650_v41 = vand.u32 2147483647, %v586_v33  ;;  %v853_v42 = vsub.f32 %v509_v28, %v1964_v16  ;;  %v440_v31 = vld [vmem:[#allocation8 + $0x1b8] sm:$0xff] }
  0xd0   : > { %v1113_v44 = vpack.c.bf16 %v1051_v35, %v1049_v34  ;;  %v984_v45 = vsub.f32 1.0, %v920_v36  ;;  %v652_v46 = vand.u32 2147483647, %v588_v37  ;;  %v855_v47 = vsub.f32 %v511_v32, %v1964_v16  ;;  %v502_v35 = vld [vmem:[#allocation9 + $0x1a8] sm:$0xff] }
  0xd1   : > { %v1046_v48 = vmax.f32 %v982_v40, 0.0  ;;  %v714_v49 = vsub.f32 1.0, %v650_v41  ;;  %v917_v50 = vand.u32 2147483647, %v853_v42  ;;  %v583_v51 = vsub.f32 %v442_v38, %v1958_v10 }
  0xd2   : > { %1166 = vmatpush1.bf16.msra.mxu0 %v1113_v44  ;;  %v1048_v52 = vmax.f32 %v984_v45, 0.0  ;;  %v716_v53 = vsub.f32 1.0, %v652_v46  ;;  %v919_v54 = vand.u32 2147483647, %v855_v47  ;;  %v585_v57 = vsub.f32 %v444_v43, %v1958_v10  ;;  %v504_v43 = vld [vmem:[#allocation9 + $0x1b8] sm:$0xff] }
  0xd3   : > { %v1110_v58 = vmul.f32 %v1046_v48, %v779_v30  ;;  %v778_v59 = vmax.f32 %v714_v49, 0.0  ;;  %v981_v60 = vsub.f32 1.0, %v917_v50  ;;  %v647_v61 = vand.u32 2147483647, %v583_v51  ;;  %v437_v50 = vld [vmem:[#allocation8 + $0x1a0] sm:$0xff] }
  0xd4   : > { %v1112_v63 = vmul.f32 %v1048_v52, %v781_v39  ;;  %v780_v0 = vmax.f32 %v716_v53, 0.0  ;;  %v983_v1 = vsub.f32 1.0, %v919_v54  ;;  %v649_v2 = vand.u32 2147483647, %v585_v57 }
  0xd5   : > { %v1045_v3 = vmax.f32 %v981_v60, 0.0  ;;  %v711_v4 = vsub.f32 1.0, %v647_v61  ;;  %v850_v5 = vsub.f32 %v506_v55, %v1960_v11  ;;  %v852_v6 = vsub.f32 %v508_v56, %v1960_v11  ;;  %v439_v55 = vld [vmem:[#allocation8 + $0x1b0] sm:$0xff]  ;;  %v501_v60 = vld [vmem:[#allocation9 + $0x1a0] sm:$0xff] }
  0xd6   : > { %v1144_v8 = vpack.c.bf16 %v1112_v63, %v1110_v58  ;;  %v1047_v9 = vmax.f32 %v983_v1, 0.0  ;;  %v713_v12 = vsub.f32 1.0, %v649_v2  ;;  %v582_v17 = vsub.f32 %v441_v62, %v1962_v15 }
  0xd7   : > { %v1109_v18 = vmul.f32 %v1045_v3, %v778_v59  ;;  %v775_v19 = vmax.f32 %v711_v4, 0.0  ;;  %v914_v20 = vand.u32 2147483647, %v850_v5  ;;  %v916_v21 = vand.u32 2147483647, %v852_v6  ;;  %v434_v6 = vld [vmem:[#allocation8 + $0x188] sm:$0xff] }
  0xd8   : > { %1167 = vmatprep.subr.bf16.mxu0 %v1144_v8  ;;  %v1111_v23 = vmul.f32 %v1047_v9, %v780_v0  ;;  %v777_v24 = vmax.f32 %v713_v12, 0.0  ;;  %v584_v25 = vsub.f32 %v443_v7, %v1962_v15  ;;  %v646_v26 = vand.u32 2147483647, %v582_v17  ;;  %v503_v0 = vld [vmem:[#allocation9 + $0x1b0] sm:$0xff] }
  0xd9   : > { %v978_v27 = vsub.f32 1.0, %v914_v20  ;;  %v980_v28 = vsub.f32 1.0, %v916_v21  ;;  %v849_v29 = vsub.f32 %v505_v13, %v1964_v16  ;;  %v851_v30 = vsub.f32 %v507_v14, %v1964_v16  ;;  %v436_v13 = vld [vmem:[#allocation8 + $0x198] sm:$0xff] }
  0xda   : > { %v1143_v32 = vpack.c.bf16 %v1111_v23, %v1109_v18  ;;  %v648_v33 = vand.u32 2147483647, %v584_v25  ;;  %v710_v34 = vsub.f32 1.0, %v646_v26  ;;  %v579_v36 = vsub.f32 %v438_v22, %v1958_v10 }
  0xdb   : > { %v1042_v37 = vmax.f32 %v978_v27, 0.0  ;;  %v1044_v38 = vmax.f32 %v980_v28, 0.0  ;;  %v913_v39 = vand.u32 2147483647, %v849_v29  ;;  %v915_v40 = vand.u32 2147483647, %v851_v30 }
  0xdc   : > { %1168 = vmatpush2.bf16.msra.mxu0 %v1143_v32  ;;  %v712_v41 = vsub.f32 1.0, %v648_v33  ;;  %v774_v42 = vmax.f32 %v710_v34, 0.0  ;;  %v581_v44 = vsub.f32 %v440_v31, %v1958_v10  ;;  %v643_v45 = vand.u32 2147483647, %v579_v36  ;;  %v498_v27 = vld [vmem:[#allocation9 + $0x188] sm:$0xff]  ;;  %v500_v28 = vld [vmem:[#allocation9 + $0x198] sm:$0xff] }
  0xdd   : > { %v1106_v46 = vmul.f32 %v1042_v37, %v775_v19  ;;  %v1108_v47 = vmul.f32 %v1044_v38, %v777_v24  ;;  %v977_v48 = vsub.f32 1.0, %v913_v39  ;;  %v979_v49 = vsub.f32 1.0, %v915_v40  ;;  %v433_v34 = vld [vmem:[#allocation8 + $0x180] sm:$0xff] }
  0xde   : > { %v776_v51 = vmax.f32 %v712_v41, 0.0  ;;  %v645_v52 = vand.u32 2147483647, %v581_v44  ;;  %v707_v53 = vsub.f32 1.0, %v643_v45  ;;  %v846_v54 = vsub.f32 %v502_v35, %v1960_v11 }
  0xdf   : > { %v1142_v56 = vpack.c.bf16 %v1108_v47, %v1106_v46  ;;  %v1041_v57 = vmax.f32 %v977_v48, 0.0  ;;  %v1043_v58 = vmax.f32 %v979_v49, 0.0  ;;  %v848_v59 = vsub.f32 %v504_v43, %v1960_v11  ;;  %v435_v43 = vld [vmem:[#allocation8 + $0x190] sm:$0xff]  ;;  %v497_v47 = vld [vmem:[#allocation9 + $0x180] sm:$0xff] }
  0xe0   : > { %v709_v61 = vsub.f32 1.0, %v645_v52  ;;  %v771_v62 = vmax.f32 %v707_v53, 0.0  ;;  %v910_v63 = vand.u32 2147483647, %v846_v54  ;;  %v578_v1 = vsub.f32 %v437_v50, %v1962_v15  ;;  %v499_v48 = vld [vmem:[#allocation9 + $0x190] sm:$0xff]  ;;  %v430_v54 = vld [vmem:[#allocation8 + $0x168] sm:$0xff] }
  0xe1   : > { %1169 = vmatprep.subr.bf16.mxu0 %v1142_v56  ;;  %v1105_v2 = vmul.f32 %v1041_v57, %v774_v42  ;;  %v1107_v3 = vmul.f32 %v1043_v58, %v776_v51  ;;  %v912_v4 = vand.u32 2147483647, %v848_v59  ;;  %v580_v5 = vsub.f32 %v439_v55, %v1962_v15 }
  0xe2   : > { %v773_v7 = vmax.f32 %v709_v61, 0.0  ;;  %v974_v8 = vsub.f32 1.0, %v910_v63  ;;  %v642_v9 = vand.u32 2147483647, %v578_v1  ;;  %v845_v12 = vsub.f32 %v501_v60, %v1964_v16  ;;  %v432_v63 = vld [vmem:[#allocation8 + $0x178] sm:$0xff] }
  0xe3   : > { %v1141_v14 = vpack.c.bf16 %v1107_v3, %v1105_v2  ;;  %v976_v17 = vsub.f32 1.0, %v912_v4  ;;  %v644_v18 = vand.u32 2147483647, %v580_v5  ;;  %v847_v19 = vsub.f32 %v503_v0, %v1964_v16  ;;  %v494_v3 = vld [vmem:[#allocation9 + $0x168] sm:$0xff] }
  0xe4   : > { %v1038_v20 = vmax.f32 %v974_v8, 0.0  ;;  %v706_v21 = vsub.f32 1.0, %v642_v9  ;;  %v909_v22 = vand.u32 2147483647, %v845_v12  ;;  %v575_v23 = vsub.f32 %v434_v6, %v1958_v10 }
  0xe5   : > { %1170 = vmatpush2.bf16.msra.mxu0 %v1141_v14  ;;  %v1040_v24 = vmax.f32 %v976_v17, 0.0  ;;  %v708_v25 = vsub.f32 1.0, %v644_v18  ;;  %v911_v26 = vand.u32 2147483647, %v847_v19  ;;  %v577_v29 = vsub.f32 %v436_v13, %v1958_v10  ;;  %v496_v13 = vld [vmem:[#allocation9 + $0x178] sm:$0xff] }
  0xe6   : > { %v1102_v30 = vmul.f32 %v1038_v20, %v771_v62  ;;  %v770_v31 = vmax.f32 %v706_v21, 0.0  ;;  %v973_v32 = vsub.f32 1.0, %v909_v22  ;;  %v639_v33 = vand.u32 2147483647, %v575_v23  ;;  %v429_v22 = vld [vmem:[#allocation8 + $0x160] sm:$0xff] }
  0xe7   : > { %v1104_v35 = vmul.f32 %v1040_v24, %v773_v7  ;;  %v772_v36 = vmax.f32 %v708_v25, 0.0  ;;  %v975_v37 = vsub.f32 1.0, %v911_v26  ;;  %v641_v38 = vand.u32 2147483647, %v577_v29 }
  0xe8   : > { %v1037_v39 = vmax.f32 %v973_v32, 0.0  ;;  %v703_v40 = vsub.f32 1.0, %v639_v33  ;;  %v842_v41 = vsub.f32 %v498_v27, %v1960_v11  ;;  %v844_v42 = vsub.f32 %v500_v28, %v1960_v11  ;;  %v431_v27 = vld [vmem:[#allocation8 + $0x170] sm:$0xff]  ;;  %v493_v32 = vld [vmem:[#allocation9 + $0x160] sm:$0xff] }
  0xe9   : > { %v1140_v44 = vpack.c.bf16 %v1104_v35, %v1102_v30  ;;  %v1039_v45 = vmax.f32 %v975_v37, 0.0  ;;  %v705_v46 = vsub.f32 1.0, %v641_v38  ;;  %v574_v49 = vsub.f32 %v433_v34, %v1962_v15 }
  0xea   : > { %v1101_v50 = vmul.f32 %v1037_v39, %v770_v31  ;;  %v767_v51 = vmax.f32 %v703_v40, 0.0  ;;  %v906_v52 = vand.u32 2147483647, %v842_v41  ;;  %v908_v53 = vand.u32 2147483647, %v844_v42  ;;  %v426_v42 = vld [vmem:[#allocation8 + $0x148] sm:$0xff] }
  0xeb   : > { %1171 = vmatprep.subr.bf16.mxu0 %v1140_v44  ;;  %v1103_v55 = vmul.f32 %v1039_v45, %v772_v36  ;;  %v769_v56 = vmax.f32 %v705_v46, 0.0  ;;  %v576_v57 = vsub.f32 %v435_v43, %v1962_v15  ;;  %v638_v58 = vand.u32 2147483647, %v574_v49  ;;  %v495_v36 = vld [vmem:[#allocation9 + $0x170] sm:$0xff] }
  0xec   : > { %v970_v59 = vsub.f32 1.0, %v906_v52  ;;  %v972_v60 = vsub.f32 1.0, %v908_v53  ;;  %v841_v61 = vsub.f32 %v497_v47, %v1964_v16  ;;  %v843_v62 = vsub.f32 %v499_v48, %v1964_v16  ;;  %v428_v47 = vld [vmem:[#allocation8 + $0x158] sm:$0xff] }
  0xed   : > { %v1139_v0 = vpack.c.bf16 %v1103_v55, %v1101_v50  ;;  %v640_v1 = vand.u32 2147483647, %v576_v57  ;;  %v702_v2 = vsub.f32 1.0, %v638_v58  ;;  %v571_v4 = vsub.f32 %v430_v54, %v1958_v10 }
  0xee   : > { %v1034_v5 = vmax.f32 %v970_v59, 0.0  ;;  %v1036_v6 = vmax.f32 %v972_v60, 0.0  ;;  %v905_v7 = vand.u32 2147483647, %v841_v61  ;;  %v907_v8 = vand.u32 2147483647, %v843_v62 }
  0xef   : > { %1172 = vmatpush2.bf16.msra.mxu0 %v1139_v0  ;;  %v704_v9 = vsub.f32 1.0, %v640_v1  ;;  %v766_v12 = vmax.f32 %v702_v2, 0.0  ;;  %v573_v14 = vsub.f32 %v432_v63, %v1958_v10  ;;  %v635_v17 = vand.u32 2147483647, %v571_v4  ;;  %v490_v59 = vld [vmem:[#allocation9 + $0x148] sm:$0xff]  ;;  %v492_v60 = vld [vmem:[#allocation9 + $0x158] sm:$0xff] }
  0xf0   : > { %v1098_v18 = vmul.f32 %v1034_v5, %v767_v51  ;;  %v1100_v19 = vmul.f32 %v1036_v6, %v769_v56  ;;  %v969_v20 = vsub.f32 1.0, %v905_v7  ;;  %v971_v21 = vsub.f32 1.0, %v907_v8  ;;  %v425_v2 = vld [vmem:[#allocation8 + $0x140] sm:$0xff] }
  0xf1   : > { %v768_v23 = vmax.f32 %v704_v9, 0.0  ;;  %v637_v24 = vand.u32 2147483647, %v573_v14  ;;  %v699_v25 = vsub.f32 1.0, %v635_v17  ;;  %v838_v26 = vsub.f32 %v494_v3, %v1960_v11 }
  0xf2   : > { %v1138_v28 = vpack.c.bf16 %v1100_v19, %v1098_v18  ;;  %v1033_v29 = vmax.f32 %v969_v20, 0.0  ;;  %v1035_v30 = vmax.f32 %v971_v21, 0.0  ;;  %v840_v31 = vsub.f32 %v496_v13, %v1960_v11  ;;  %v427_v13 = vld [vmem:[#allocation8 + $0x150] sm:$0xff]  ;;  %v489_v19 = vld [vmem:[#allocation9 + $0x140] sm:$0xff] }
  0xf3   : > { %v701_v33 = vsub.f32 1.0, %v637_v24  ;;  %v763_v34 = vmax.f32 %v699_v25, 0.0  ;;  %v902_v35 = vand.u32 2147483647, %v838_v26  ;;  %v570_v37 = vsub.f32 %v429_v22, %v1962_v15  ;;  %v491_v20 = vld [vmem:[#allocation9 + $0x150] sm:$0xff]  ;;  %v422_v26 = vld [vmem:[#allocation8 + $0x128] sm:$0xff] }
  0xf4   : > { %1173 = vmatprep.subr.bf16.mxu0 %v1138_v28  ;;  %v1097_v38 = vmul.f32 %v1033_v29, %v766_v12  ;;  %v1099_v39 = vmul.f32 %v1035_v30, %v768_v23  ;;  %v904_v40 = vand.u32 2147483647, %v840_v31  ;;  %v572_v41 = vsub.f32 %v431_v27, %v1962_v15 }
  0xf5   : > { %v765_v43 = vmax.f32 %v701_v33, 0.0  ;;  %v966_v44 = vsub.f32 1.0, %v902_v35  ;;  %v634_v45 = vand.u32 2147483647, %v570_v37  ;;  %v837_v46 = vsub.f32 %v493_v32, %v1964_v16  ;;  %v424_v35 = vld [vmem:[#allocation8 + $0x138] sm:$0xff] }
  0xf6   : > { %v1137_v48 = vpack.c.bf16 %v1099_v39, %v1097_v38  ;;  %v968_v49 = vsub.f32 1.0, %v904_v40  ;;  %v636_v50 = vand.u32 2147483647, %v572_v41  ;;  %v839_v51 = vsub.f32 %v495_v36, %v1964_v16  ;;  %v486_v39 = vld [vmem:[#allocation9 + $0x128] sm:$0xff] }
  0xf7   : > { %v1030_v52 = vmax.f32 %v966_v44, 0.0  ;;  %v698_v53 = vsub.f32 1.0, %v634_v45  ;;  %v901_v54 = vand.u32 2147483647, %v837_v46  ;;  %v567_v55 = vsub.f32 %v426_v42, %v1958_v10 }
  0xf8   : > { %1174 = vmatpush2.bf16.msra.mxu0 %v1137_v48  ;;  %v1032_v56 = vmax.f32 %v968_v49, 0.0  ;;  %v700_v57 = vsub.f32 1.0, %v636_v50  ;;  %v903_v58 = vand.u32 2147483647, %v839_v51  ;;  %v569_v61 = vsub.f32 %v428_v47, %v1958_v10  ;;  %v488_v47 = vld [vmem:[#allocation9 + $0x138] sm:$0xff] }
  0xf9   : > { %v1094_v62 = vmul.f32 %v1030_v52, %v763_v34  ;;  %v762_v63 = vmax.f32 %v698_v53, 0.0  ;;  %v965_v0 = vsub.f32 1.0, %v901_v54  ;;  %v631_v1 = vand.u32 2147483647, %v567_v55  ;;  %v421_v54 = vld [vmem:[#allocation8 + $0x120] sm:$0xff] }
  0xfa   : > { %v1096_v3 = vmul.f32 %v1032_v56, %v765_v43  ;;  %v764_v4 = vmax.f32 %v700_v57, 0.0  ;;  %v967_v5 = vsub.f32 1.0, %v903_v58  ;;  %v633_v6 = vand.u32 2147483647, %v569_v61 }
  0xfb   : > { %v1029_v7 = vmax.f32 %v965_v0, 0.0  ;;  %v695_v8 = vsub.f32 1.0, %v631_v1  ;;  %v834_v9 = vsub.f32 %v490_v59, %v1960_v11  ;;  %v836_v12 = vsub.f32 %v492_v60, %v1960_v11  ;;  %v423_v59 = vld [vmem:[#allocation8 + $0x130] sm:$0xff]  ;;  %v485_v0 = vld [vmem:[#allocation9 + $0x120] sm:$0xff] }
  0xfc   : > { %v1136_v14 = vpack.c.bf16 %v1096_v3, %v1094_v62  ;;  %v1031_v17 = vmax.f32 %v967_v5, 0.0  ;;  %v697_v18 = vsub.f32 1.0, %v633_v6  ;;  %v566_v21 = vsub.f32 %v425_v2, %v1962_v15 }
  0xfd   : > { %v1093_v22 = vmul.f32 %v1029_v7, %v762_v63  ;;  %v759_v23 = vmax.f32 %v695_v8, 0.0  ;;  %v898_v24 = vand.u32 2147483647, %v834_v9  ;;  %v900_v25 = vand.u32 2147483647, %v836_v12  ;;  %v418_v12 = vld [vmem:[#allocation8 + $0x108] sm:$0xff] }
  0xfe   : > { %1175 = vmatprep.subr.bf16.mxu0 %v1136_v14  ;;  %v1095_v27 = vmul.f32 %v1031_v17, %v764_v4  ;;  %v761_v28 = vmax.f32 %v697_v18, 0.0  ;;  %v568_v29 = vsub.f32 %v427_v13, %v1962_v15  ;;  %v630_v30 = vand.u32 2147483647, %v566_v21  ;;  %v487_v4 = vld [vmem:[#allocation9 + $0x130] sm:$0xff] }
  0xff   : > { %v962_v31 = vsub.f32 1.0, %v898_v24  ;;  %v964_v32 = vsub.f32 1.0, %v900_v25  ;;  %v833_v33 = vsub.f32 %v489_v19, %v1964_v16  ;;  %v835_v34 = vsub.f32 %v491_v20, %v1964_v16  ;;  %v420_v19 = vld [vmem:[#allocation8 + $0x118] sm:$0xff] }
 0x100   : > { %v1135_v36 = vpack.c.bf16 %v1095_v27, %v1093_v22  ;;  %v632_v37 = vand.u32 2147483647, %v568_v29  ;;  %v694_v38 = vsub.f32 1.0, %v630_v30  ;;  %v563_v40 = vsub.f32 %v422_v26, %v1958_v10 }
 0x101   : > { %v1026_v41 = vmax.f32 %v962_v31, 0.0  ;;  %v1028_v42 = vmax.f32 %v964_v32, 0.0  ;;  %v897_v43 = vand.u32 2147483647, %v833_v33  ;;  %v899_v44 = vand.u32 2147483647, %v835_v34 }
 0x102   : > { %1176 = vmatpush2.bf16.msra.mxu0 %v1135_v36  ;;  %v696_v45 = vsub.f32 1.0, %v632_v37  ;;  %v758_v46 = vmax.f32 %v694_v38, 0.0  ;;  %v565_v48 = vsub.f32 %v424_v35, %v1958_v10  ;;  %v627_v49 = vand.u32 2147483647, %v563_v40  ;;  %v482_v31 = vld [vmem:[#allocation9 + $0x108] sm:$0xff]  ;;  %v484_v32 = vld [vmem:[#allocation9 + $0x118] sm:$0xff] }
 0x103   : > { %v1090_v50 = vmul.f32 %v1026_v41, %v759_v23  ;;  %v1092_v51 = vmul.f32 %v1028_v42, %v761_v28  ;;  %v961_v52 = vsub.f32 1.0, %v897_v43  ;;  %v963_v53 = vsub.f32 1.0, %v899_v44  ;;  %v417_v38 = vld [vmem:[#allocation8 + $0x100] sm:$0xff] }
 0x104   : > { %v760_v55 = vmax.f32 %v696_v45, 0.0  ;;  %v629_v56 = vand.u32 2147483647, %v565_v48  ;;  %v691_v57 = vsub.f32 1.0, %v627_v49  ;;  %v830_v58 = vsub.f32 %v486_v39, %v1960_v11 }
 0x105   : > { %v1134_v60 = vpack.c.bf16 %v1092_v51, %v1090_v50  ;;  %v1025_v61 = vmax.f32 %v961_v52, 0.0  ;;  %v1027_v62 = vmax.f32 %v963_v53, 0.0  ;;  %v832_v63 = vsub.f32 %v488_v47, %v1960_v11  ;;  %v419_v47 = vld [vmem:[#allocation8 + $0x110] sm:$0xff]  ;;  %v481_v50 = vld [vmem:[#allocation9 + $0x100] sm:$0xff] }
 0x106   : > { %v693_v1 = vsub.f32 1.0, %v629_v56  ;;  %v755_v2 = vmax.f32 %v691_v57, 0.0  ;;  %v894_v3 = vand.u32 2147483647, %v830_v58  ;;  %v562_v5 = vsub.f32 %v421_v54, %v1962_v15  ;;  %v483_v51 = vld [vmem:[#allocation9 + $0x110] sm:$0xff]  ;;  %v1145_v57 = vld [vmem:[%s1952_s16] sm:$0xff] }
 0x107   : > { %1177 = vmatprep.subr.bf16.mxu0 %v1134_v60  ;;  %v1089_v6 = vmul.f32 %v1025_v61, %v758_v46  ;;  %v1091_v7 = vmul.f32 %v1027_v62, %v760_v55  ;;  %v896_v8 = vand.u32 2147483647, %v832_v63  ;;  %v564_v9 = vsub.f32 %v423_v59, %v1962_v15 }
 0x108   : > { %v757_v13 = vmax.f32 %v693_v1, 0.0  ;;  %v958_v14 = vsub.f32 1.0, %v894_v3  ;;  %v626_v17 = vand.u32 2147483647, %v562_v5  ;;  %v829_v18 = vsub.f32 %v485_v0, %v1964_v16 }
 0x109   : > { %v1133_v20 = vpack.c.bf16 %v1091_v7, %v1089_v6  ;;  %v960_v21 = vsub.f32 1.0, %v896_v8  ;;  %v628_v22 = vand.u32 2147483647, %v564_v9  ;;  %v831_v23 = vsub.f32 %v487_v4, %v1964_v16 }
 0x10a   : > { %v1022_v24 = vmax.f32 %v958_v14, 0.0  ;;  %v690_v25 = vsub.f32 1.0, %v626_v17  ;;  %v893_v26 = vand.u32 2147483647, %v829_v18  ;;  %v559_v27 = vsub.f32 %v418_v12, %v1958_v10 }
 0x10b   : > { %1178 = vmatpush2.bf16.msra.mxu0 %v1133_v20  ;;  %v1024_v28 = vmax.f32 %v960_v21, 0.0  ;;  %v692_v29 = vsub.f32 1.0, %v628_v22  ;;  %v895_v30 = vand.u32 2147483647, %v831_v23  ;;  %v561_v33 = vsub.f32 %v420_v19, %v1958_v10 }
 0x10c   : > { %v1086_v34 = vmul.f32 %v1022_v24, %v755_v2  ;;  %v754_v35 = vmax.f32 %v690_v25, 0.0  ;;  %v957_v36 = vsub.f32 1.0, %v893_v26  ;;  %v623_v37 = vand.u32 2147483647, %v559_v27 }
 0x10d   : > { %v1088_v39 = vmul.f32 %v1024_v28, %v757_v13  ;;  %v756_v40 = vmax.f32 %v692_v29, 0.0  ;;  %v959_v41 = vsub.f32 1.0, %v895_v30  ;;  %v625_v42 = vand.u32 2147483647, %v561_v33 }
 0x10e   : > { %v1021_v43 = vmax.f32 %v957_v36, 0.0  ;;  %v687_v44 = vsub.f32 1.0, %v623_v37  ;;  %v826_v45 = vsub.f32 %v482_v31, %v1960_v11  ;;  %v828_v46 = vsub.f32 %v484_v32, %v1960_v11 }
 0x10f   : > { %v1132_v48 = vpack.c.bf16 %v1088_v39, %v1086_v34  ;;  %v1023_v49 = vmax.f32 %v959_v41, 0.0  ;;  %v689_v10 = vsub.f32 1.0, %v625_v42  ;;  %v558_v52 = vsub.f32 %v417_v38, %v1962_v15 }
 0x110   : > { %v1085_v53 = vmul.f32 %v1021_v43, %v754_v35  ;;  %v751_v54 = vmax.f32 %v687_v44, 0.0  ;;  %v890_v55 = vand.u32 2147483647, %v826_v45  ;;  %v892_v56 = vand.u32 2147483647, %v828_v46 }
 0x111   : > { %1179 = vmatprep.subr.bf16.mxu0 %v1132_v48  ;;  %v1087_v58 = vmul.f32 %v1023_v49, %v756_v40  ;;  %v753_v59 = vmax.f32 %v689_v10, 0.0  ;;  %v560_v60 = vsub.f32 %v419_v47, %v1962_v15  ;;  %v622_v61 = vand.u32 2147483647, %v558_v52 }
 0x112   : > { %v954_v11 = vsub.f32 1.0, %v890_v55  ;;  %v956_v62 = vsub.f32 1.0, %v892_v56  ;;  %v825_v63 = vsub.f32 %v481_v50, %v1964_v16  ;;  %v827_v0 = vsub.f32 %v483_v51, %v1964_v16 }
 0x113   : > { %v1131_v1 = vpack.c.bf16 %v1087_v58, %v1085_v53  ;;  %v624_v2 = vand.u32 2147483647, %v560_v60  ;;  %v686_v3 = vsub.f32 1.0, %v622_v61  ;;  %v1147_v4 = vcombine.high %v1145_v57, %v1145_v57 }
 0x114   : > { %v1018_v5 = vmax.f32 %v954_v11, 0.0  ;;  %v1020_v6 = vmax.f32 %v956_v62, 0.0  ;;  %v889_v7 = vand.u32 2147483647, %v825_v63  ;;  %v891_v8 = vand.u32 2147483647, %v827_v0 }
 0x115   : > { %1180 = vmatpush2.bf16.msra.mxu0 %v1131_v1  ;;  %v688_v9 = vsub.f32 1.0, %v624_v2  ;;  %v750_v12 = vmax.f32 %v686_v3, 0.0  ;;  %v1150_v13 = vpack.c.bf16 %v1147_v4, %v1147_v4  ;;  %v1149_v25 = vpack.c.bf16 %v1145_v57, %v1145_v57 }
 0x116   : > { %v1082_v15 = vmul.f32 %v1018_v5, %v751_v54  ;;  %v1084_v14 = vmul.f32 %v1020_v6, %v753_v59  ;;  %v953_v17 = vsub.f32 1.0, %v889_v7  ;;  %v955_v18 = vsub.f32 1.0, %v891_v8 }
 0x117   : > { %v752_v19 = vmax.f32 %v688_v9, 0.0  ;;  %1183 = vmatprep.mubr.bf16.mxu0 %v1150_v13 }
 0x118   : > { %v1130_v16 = vpack.c.bf16 %v1084_v14, %v1082_v15  ;;  %v1017_v20 = vmax.f32 %v953_v17, 0.0  ;;  %v1019_v21 = vmax.f32 %v955_v18, 0.0 }
 0x11a   : > { %1181 = vmatprep.subr.bf16.mxu0 %v1130_v16  ;;  %v1081_v22 = vmul.f32 %v1017_v20, %v750_v12  ;;  %v1083_v23 = vmul.f32 %v1019_v21, %v752_v19 }
 0x11c   : > { %v1129_v24 = vpack.c.bf16 %v1083_v23, %v1081_v22 }
 0x11e   : > { %1182 = vmatpush2.bf16.msra.mxu0 %v1129_v24 }
 0x121   : > { %1184 = vmatmul.mubr.bf16.vlgmr.msra.gmra.mxu0 %v1149_v25 }
 0x1e1   : > { %v1185_v26 = vpop.f32.mrf.mxu0 }
 0x1e3   : > { %v1187_v27 = vpop.f32.mrf.mxu0 }
 0x1e4   : > { %v1195_v28 = vcombine.low %v1185_v26, %v1187_v27 }
 0x1e5   : > { %v1189_v29 = vpop.f32.mrf.mxu0 }
 0x1e6   : > { %1203 = vst [vmem:[%s376_s26] sm:$0xff] %v1195_v28 }
 0x1e7   : > { %v1190_v30 = vpop.f32.mrf.mxu0 }
 0x1e8   : > { %1642 = shalt.err (!%p1639_p7)
}
 0x1e9   : > { %s1643_s17 = scalar_lea.hbm %s2101_s25, 128  ;;  %s1647_s6 = scalar_lea.hbm %s2154_s5, 256 }
 0x1ea   : > { %p1644_p13 = scmp.ne.s32.totalorder %s2101_s25, %s1643_s17  ;;  %p1648_p5 = scmp.lt.s32.totalorder %s2101_s25, %s2154_s5 }
 0x1eb   : > { %p1649_p11 = scmp.lt.s32.totalorder %s1647_s6, %s1643_s17 }
 0x1ec   : > { %p1645_p8 = pnand %p1644_p13, %p1854_p3 }
 0x1ed   : > { %p1650_p4 = por %p1649_p11, %p1648_p5 }
 0x1ee   : > { %p1646_p2 = pneg %p1645_p8 }
 0x1f0   : > { %p1651_p10 = pnand %p1650_p4, %p1646_p2 }
 0x1f2   : > { %1654 = shalt.err (!%p1651_p10)
}
 0x1f3   : > { %1411 = dma.vmem_to_hbm [thread:$0]  (%p1854_p3), %s2103_s2, 128, %s2101_s25, %s1205_s30  }
 0x1f4 PF: > { %s1231_s13 = sand.u32 1, %s1705_s18   ;;  %p2191_p1 = scmp.ge.s32.totalorder %s1725_s23, 2 }
 0x1f5   : > { %s1232_s28 = scalar_lea.sflag [#allocation5], %s1231_s13 }
 0x1f6   : > { %p1431_p12 = pnand %p2191_p1, %p1810_p6 }
 0x1f8   : > { %p1432_p0 = pneg %p1431_p12 }
 0x1fa   : > { %1700 = dma.done.wait (%p1432_p0), %s1232_s28, 128  }
 0x1fb   : > { %1702 = vsyncadd (%p1432_p0), %s1232_s28, 4294967168  ;;  %s25_s23 = sadd.s32 1, %s1725_s23   ;;  %s2192_s15 = sld [smem:[#allocation21_spill]] }
 0x1fc   : > { %p22_p9 = scmp.ge.s32.totalorder %s25_s23, 4   ;;  %s2193_s16 = sld [smem:[#allocation20_spill]] }
 0x1fd   : > { %s2194_s18 = smov %s1709_s19  ;;  %s2195_s19 = smov %s1713_s20 }
 0x1fe   : > { %s2197_s21 = smov %s1721_s22  ;;  %24 = sbr.rel (!%p22_p9) target bundleno = 12 (0xc), region = 127 }
 0x201   : > { %s2196_s20 = smov %s2192_s15 }
 0x202   : > { %s2198_s22 = smov %s2193_s16 }
 0x203   :  { %1237 = vsyncpa [#allocation4], 1 }
 0x204   :  { %1239 = vsyncpa [#allocation4 + $0x1], 1 }
 0x205   :  { %1240 = vsyncpa [#allocation7], 1 }
 0x206   :  { %1242 = vsyncpa [#allocation7 + $0x1], 1 }
 0x207   :  { %1243 = vsyncpa [#allocation10], 1 }
 0x208   :  { %1244 = vsyncpa [#allocation5], 1 }
 0x209   :  { %1246 = vsyncpa [#allocation5 + $0x1], 1 }

</bundles_post_ra>
